<compile_context>
chip_gen: v7x
topology: tpu7x:2x2x1
jax: 0.10.0
libtpu: 0.0.40
codegen_flags: <defaults>
</compile_context>

<pallas_src>
import jax
import jax.numpy as jnp
import numpy as np
from jax import lax
from jax.experimental import pallas as pl
from jax.experimental.pallas import tpu as pltpu

BN_EPS = 1e-5


def _hardswish(y):
    # nn.Hardswish: x * relu6(x + 3) / 6
    return y * jnp.clip(y + 3.0, 0.0, 6.0) * (1.0 / 6.0)


def _hardsigmoid(y):
    return jnp.clip(y + 3.0, 0.0, 6.0) * (1.0 / 6.0)


# ----------------------------- fused Pallas kernel -----------------------------

def _stage_tail(z, refs, o_ref):
    """Everything after conv_down. z: (H2, Wo*Cmid) in lane-major (row, W*C) layout."""
    (w1_ref, s1_ref, bi1_ref,          # conv1: block-diag weight, tiled scale/bias
     w2_ref, s2_ref, bi2_ref,          # conv2
     mb_ref, sb_ref, bb_ref,           # blocks: (n,3,K,K) band mats, (n,1,K) scale/bias
     a1_ref, a2_ref, bse_ref,          # ESE: folded mean->fc matrices + bias
     t1_ref, t2_ref,                   # ESE: gate broadcast (channel -> W*C) matrices
     c1_ref, c2_ref, s3_ref, b3_ref    # conv3 split matrices + tiled scale/bias
     ) = refs
    f32 = jnp.float32
    h2 = z.shape[0]

    # conv1 / conv2 (1x1) -- z is already VMEM/vreg resident, read once.
    y1 = _hardswish(jnp.dot(z, w1_ref[...], preferred_element_type=f32)
                    * s1_ref[...] + bi1_ref[...])
    y2 = _hardswish(jnp.dot(z, w2_ref[...], preferred_element_type=f32)
                    * s2_ref[...] + bi2_ref[...])

    # Residual block chain, y2 stays VMEM-resident the whole time.
    # TODO(synk): `block_fn` is a constructor argument not defined in the given
    # source; implemented as residual ConvBNLayer(3x3, pad=1) with shortcut=True:
    #   y2 = y2 + hardswish(bn(conv3x3(y2)))
    nblk = mb_ref.shape[0]
    row = lax.broadcasted_iota(jnp.int32, y2.shape, 0)
    for t in range(nblk):
        up = jnp.where(row == 0, 0.0, pltpu.roll(y2, shift=1, axis=0))        # row i-1
        dn = jnp.where(row == h2 - 1, 0.0, pltpu.roll(y2, shift=h2 - 1, axis=0))  # row i+1
        h = (jnp.dot(up, mb_ref[t, 0], preferred_element_type=f32)
             + jnp.dot(y2, mb_ref[t, 1], preferred_element_type=f32)
             + jnp.dot(dn, mb_ref[t, 2], preferred_element_type=f32))
        y2 = y2 + _hardswish(h * sb_ref[t] + bb_ref[t])

    # EffectiveSELayer on the (virtual) concat [y1, y2]: channel means folded
    # into a1/a2, gate broadcast to (1, Wo*Cb) via selection matmuls.
    cs1 = jnp.sum(y1, axis=0, keepdims=True)       # (1, Wo*Cb)
    cs2 = jnp.sum(y2, axis=0, keepdims=True)
    gate = _hardsigmoid(jnp.dot(cs1, a1_ref[...], preferred_element_type=f32)
                        + jnp.dot(cs2, a2_ref[...], preferred_element_type=f32)
                        + bse_ref[...])            # (1, Cmid)
    y1 = y1 * jnp.dot(gate, t1_ref[...], preferred_element_type=f32)
    y2 = y2 * jnp.dot(gate, t2_ref[...], preferred_element_type=f32)

    # conv3 (1x1, Cmid -> Cout), concat folded into the two split matrices.
    out = (jnp.dot(y1, c1_ref[...], preferred_element_type=f32)
           + jnp.dot(y2, c2_ref[...], preferred_element_type=f32))
    o_ref[0] = _hardswish(out * s3_ref[...] + b3_ref[...])   # lane-dense (H2, Wo*Cout) store


def _csp_down_kernel(x_ref, md_ref, sd_ref, bd_ref, *refs):
    # x_ref: (1, H2, 2*W*Cin): even/odd input rows side by side (free wrapper reshape).
    o_ref = refs[-1]
    f32 = jnp.float32
    xv = x_ref[0]
    wcin = xv.shape[1] // 2
    even = xv[:, :wcin]                 # input rows 2i
    odd = xv[:, wcin:]                  # input rows 2i+1
    row = lax.broadcasted_iota(jnp.int32, even.shape, 0)
    odd_up = jnp.where(row == 0, 0.0, pltpu.roll(odd, shift=1, axis=0))   # rows 2i-1 (zero pad)
    # 3x3 stride-2 pad-1 conv as three banded matmuls, K = W*Cin.
    z = (jnp.dot(odd_up, md_ref[0], preferred_element_type=f32)
         + jnp.dot(even, md_ref[1], preferred_element_type=f32)
         + jnp.dot(odd, md_ref[2], preferred_element_type=f32))
    z = _hardswish(z * sd_ref[...] + bd_ref[...])
    _stage_tail(z, refs[:-1], o_ref)


def _csp_nodown_kernel(x_ref, *refs):
    o_ref = refs[-1]
    _stage_tail(x_ref[0], refs[:-1], o_ref)


# ----------------------------- wrapper-side matrix prep -----------------------------

def _band3x3(w, wo, stride):
    """w: (3,3,Cin,Cout) HWIO -> (3, Win*Cin, Wo*Cout) band matrices.

    out[i, j*Cout+o] = sum_kh rows_kh[i, :] @ M[kh], where rows_kh selects input
    row stride*i + kh - 1 (zero-padded).  W-direction zero padding is baked in.
    """
    _, _, cin, cout = w.shape
    win_n = wo * stride
    win = np.arange(win_n)[:, None]
    j = np.arange(wo)[None, :]
    kw = win - (stride * j - 1)
    valid = ((kw >= 0) & (kw <= 2)).astype(np.float32)
    kw_c = np.clip(kw, 0, 2)
    g = w[:, kw_c, :, :] * valid[None, :, :, None, None]   # (3, Win, Wo, Cin, Cout)
    g = jnp.transpose(g, (0, 1, 3, 2, 4))                  # (3, Win, Cin, Wo, Cout)
    return g.reshape(3, win_n * cin, wo * cout)


def _tile_sb(p, wo):
    return jnp.tile(p['scale'], (1, wo)), jnp.tile(p['bias'], (1, wo))


def csp_res_stage_forward(x, params):
    """x: (N, H, W, ch_in) NHWC.  Returns (N, H_out, W_out, ch_out)."""
    n_img, h, w, cin = x.shape
    down = params['conv_down']
    blocks = params['blocks']
    assert len(blocks) >= 1
    cmid = params['conv1']['w'].shape[2]
    cb = params['conv1']['w'].shape[3]            # ch_mid // 2
    cout = params['conv3']['w'].shape[3]
    f32 = jnp.float32

    if down is not None:
        assert h % 2 == 0 and w % 2 == 0
        h2, wo = h // 2, w // 2
        x2 = x.reshape(n_img, h2, 2 * w * cin)    # free reshape: even|odd rows in lanes
        md = _band3x3(down['w'], wo, 2)           # (3, W*Cin, Wo*Cmid)
        sd, bd = _tile_sb(down, wo)
        head_args = [x2, md, sd, bd]
        kernel = _csp_down_kernel
    else:
        assert cin == cmid, "stride=1 CSPResStage requires ch_in == ch_mid"
        h2, wo = h, w
        x2 = x.reshape(n_img, h2, w * cin)
        head_args = [x2]
        kernel = _csp_nodown_kernel

    eye_w = jnp.eye(wo, dtype=f32)

    # conv1 / conv2 as block-diagonal 1x1 matmuls in (row, W*C) layout.
    w1 = params['conv1']['w'].reshape(cmid, cb)
    w2 = params['conv2']['w'].reshape(cmid, cb)
    b1m = jnp.kron(eye_w, w1)
    b2m = jnp.kron(eye_w, w2)
    s1, bi1 = _tile_sb(params['conv1'], wo)
    s2, bi2 = _tile_sb(params['conv2'], wo)

    # Residual 3x3 blocks: banded matrices + tiled scale/bias, stacked over n.
    mb = jnp.stack([_band3x3(bp['w'], wo, 1) for bp in blocks])        # (n,3,Wo*cb,Wo*cb)
    sb = jnp.stack([jnp.tile(bp['scale'], (1, wo)) for bp in blocks])  # (n,1,Wo*cb)
    bb = jnp.stack([jnp.tile(bp['bias'], (1, wo)) for bp in blocks])

    # EffectiveSE: channel-mean + fc folded into two (Wo*cb, Cmid) matrices;
    # gate broadcast back to (1, Wo*cb) via selection matrices T1/T2.
    w_se = params['attn']['w']                    # (Cmid, Cmid)
    b_se = params['attn']['bias']                 # (1, Cmid)
    hw = float(h2 * wo)
    g6 = jnp.kron(jnp.ones((wo, 1), f32), jnp.eye(cb, dtype=f32))      # (Wo*cb, cb)
    a1 = (g6 @ w_se[:cb, :]) / hw
    a2 = (g6 @ w_se[cb:, :]) / hw
    e1 = jnp.concatenate([jnp.eye(cb, dtype=f32), jnp.zeros((cmid - cb, cb), f32)], axis=0)
    e2 = jnp.concatenate([jnp.zeros((cmid - cb, cb), f32), jnp.eye(cb, dtype=f32)], axis=0)
    t1 = jnp.kron(jnp.ones((1, wo), f32), e1)     # (Cmid, Wo*cb)
    t2 = jnp.kron(jnp.ones((1, wo), f32), e2)

    # conv3 (1x1, Cmid -> Cout): concat folded into two split matrices.
    w3 = params['conv3']['w'].reshape(cmid, cout)
    c1 = jnp.kron(eye_w, w3[:cb, :])              # (Wo*cb, Wo*Cout)
    c2 = jnp.kron(eye_w, w3[cb:, :])
    s3, b3 = _tile_sb(params['conv3'], wo)

    tail_args = [b1m, s1, bi1, b2m, s2, bi2, mb, sb, bb,
                 a1, a2, b_se, t1, t2, c1, c2, s3, b3]
    args = head_args + tail_args

    def const_spec(a):
        r = a.ndim
        return pl.BlockSpec(a.shape, lambda i, _r=r: (0,) * _r)

    in_specs = [pl.BlockSpec((1,) + x2.shape[1:], lambda i: (i, 0, 0))]
    in_specs += [const_spec(a) for a in args[1:]]

    out = pl.pallas_call(
        kernel,
        grid=(n_img,),
        in_specs=in_specs,
        out_specs=pl.BlockSpec((1, h2, wo * cout), lambda i: (i, 0, 0)),
        out_shape=jax.ShapeDtypeStruct((n_img, h2, wo * cout), jnp.float32),
        compiler_params=pltpu.CompilerParams(dimension_semantics=("parallel",)),
    )(*args)
    return out.reshape(n_img, h2, wo, cout)       # free reshape (row-major)


# ----------------------------- parameters -----------------------------

def init_conv_bn(key, cin, cout, ksize):
    ks = jax.random.split(key, 5)
    fan_in = ksize * ksize * cin
    w = jax.random.normal(ks[0], (ksize, ksize, cin, cout), jnp.float32) / np.sqrt(fan_in)
    gamma = jax.random.uniform(ks[1], (cout,), jnp.float32, 0.5, 1.5)
    beta = 0.1 * jax.random.normal(ks[2], (cout,), jnp.float32)
    rmean = 0.1 * jax.random.normal(ks[3], (cout,), jnp.float32)
    rvar = jax.random.uniform(ks[4], (cout,), jnp.float32, 0.5, 1.5)
    scale = gamma / jnp.sqrt(rvar + BN_EPS)
    bias = beta - rmean * scale
    return {'w': w, 'scale': scale.reshape(1, cout), 'bias': bias.reshape(1, cout)}


def init_csp_res_stage(key, ch_in, ch_out, n, stride):
    ch_mid = (ch_in + ch_out) // 2
    keys = jax.random.split(key, 6 + n)
    params = {}
    params['conv_down'] = init_conv_bn(keys[0], ch_in, ch_mid, 3) if stride == 2 else None
    params['conv1'] = init_conv_bn(keys[1], ch_mid, ch_mid // 2, 1)
    params['conv2'] = init_conv_bn(keys[2], ch_mid, ch_mid // 2, 1)
    params['blocks'] = [init_conv_bn(keys[3 + i], ch_mid // 2, ch_mid // 2, 3)
                        for i in range(n)]
    kf = jax.random.split(keys[3 + n], 2)
    params['attn'] = {
        'w': jax.random.normal(kf[0], (ch_mid, ch_mid), jnp.float32) / np.sqrt(ch_mid),
        'bias': 0.1 * jax.random.normal(kf[1], (1, ch_mid), jnp.float32),
    }
    params['conv3'] = init_conv_bn(keys[4 + n], ch_mid, ch_out, 1)
    return params


# ----------------------------- pure-JAX reference -----------------------------

def _ref_convbn(x, p, stride, padding):
    y = lax.conv_general_dilated(x, p['w'], (stride, stride),
                                 [(padding, padding), (padding, padding)],
                                 dimension_numbers=('NHWC', 'HWIO', 'NHWC'))
    y = y * p['scale'].reshape(1, 1, 1, -1) + p['bias'].reshape(1, 1, 1, -1)
    return _hardswish(y)


def _ref_forward(x, params):
    if params['conv_down'] is not None:
        x = _ref_convbn(x, params['conv_down'], 2, 1)
    y1 = _ref_convbn(x, params['conv1'], 1, 0)
    y2 = _ref_convbn(x, params['conv2'], 1, 0)
    for bp in params['blocks']:
        y2 = y2 + _ref_convbn(y2, bp, 1, 1)
    y = jnp.concatenate([y1, y2], axis=-1)
    se = jnp.mean(y, axis=(1, 2), keepdims=True)
    se = jnp.einsum('nhwc,co->nhwo', se, params['attn']['w']) \
        + params['attn']['bias'].reshape(1, 1, 1, -1)
    se = jnp.clip(se + 3.0, 0.0, 6.0) / 6.0
    y = y * se
    return _ref_convbn(y, params['conv3'], 1, 0)


if __name__ == "__main__":
    key = jax.random.PRNGKey(0)
    kx1, kp1, kx2, kp2 = jax.random.split(key, 4)
    fwd = jax.jit(csp_res_stage_forward)

    # Config 1: CSPResStage(block_fn, ch_in=8, ch_out=16, n=2, stride=2)
    # PyTorch input would be NCHW (2, 8, 16, 16); kernel layout is NHWC.
    N, ch_in, H, W = 2, 8, 16, 16
    ch_out, n_blocks, stride = 16, 2, 2
    x = jax.random.normal(kx1, (N, H, W, ch_in), jnp.float32)
    params = init_csp_res_stage(kp1, ch_in, ch_out, n_blocks, stride)
    out = jax.block_until_ready(fwd(x, params))
    assert out.shape == (N, H // 2, W // 2, ch_out), out.shape
    ref = jax.block_until_ready(_ref_forward(x, params))
    np.testing.assert_allclose(np.asarray(out), np.asarray(ref), rtol=5e-4, atol=5e-4)

    # Config 2: stride=1 path (no conv_down); module requires ch_in == ch_mid.
    N2, ci2, H2, W2 = 2, 16, 8, 8
    x_b = jax.random.normal(kx2, (N2, H2, W2, ci2), jnp.float32)
    params_b = init_csp_res_stage(kp2, ci2, 16, 1, 1)
    out_b = jax.block_until_ready(fwd(x_b, params_b))
    assert out_b.shape == (N2, H2, W2, 16), out_b.shape
    ref_b = jax.block_until_ready(_ref_forward(x_b, params_b))
    np.testing.assert_allclose(np.asarray(out_b), np.asarray(ref_b), rtol=5e-4, atol=5e-4)

    print("KERNEL_OK")
</pallas_src>

<mosaic_0001>
module attributes {stable_mosaic.version = 11 : i64} {
  func.func @_csp_down_kernel(%arg0: i32, %arg1: memref<1x8x256xf32, #tpu.memory_space<vmem>>, %arg2: memref<3x128x96xf32, #tpu.memory_space<vmem>>, %arg3: memref<1x96xf32, #tpu.memory_space<vmem>>, %arg4: memref<1x96xf32, #tpu.memory_space<vmem>>, %arg5: memref<96x48xf32, #tpu.memory_space<vmem>>, %arg6: memref<1x48xf32, #tpu.memory_space<vmem>>, %arg7: memref<1x48xf32, #tpu.memory_space<vmem>>, %arg8: memref<96x48xf32, #tpu.memory_space<vmem>>, %arg9: memref<1x48xf32, #tpu.memory_space<vmem>>, %arg10: memref<1x48xf32, #tpu.memory_space<vmem>>, %arg11: memref<2x3x48x48xf32, #tpu.memory_space<vmem>>, %arg12: memref<2x1x48xf32, #tpu.memory_space<vmem>>, %arg13: memref<2x1x48xf32, #tpu.memory_space<vmem>>, %arg14: memref<48x12xf32, #tpu.memory_space<vmem>>, %arg15: memref<48x12xf32, #tpu.memory_space<vmem>>, %arg16: memref<1x12xf32, #tpu.memory_space<vmem>>, %arg17: memref<12x48xf32, #tpu.memory_space<vmem>>, %arg18: memref<12x48xf32, #tpu.memory_space<vmem>>, %arg19: memref<48x128xf32, #tpu.memory_space<vmem>>, %arg20: memref<48x128xf32, #tpu.memory_space<vmem>>, %arg21: memref<1x128xf32, #tpu.memory_space<vmem>>, %arg22: memref<1x128xf32, #tpu.memory_space<vmem>>, %arg23: memref<1x8x128xf32, #tpu.memory_space<vmem>>) attributes {dimension_semantics = [#tpu.dimension_semantics<parallel>], iteration_bounds = array<i64: 2>, scalar_prefetch = 0 : i64, scratch_operands = 0 : i64, tpu.core_type = #tpu.core_type<tc>, window_params = [{transform_indices = @transform_0, window_bounds = array<i64: 1, 8, 256>}, {pipeline_mode = #tpu.pipeline_mode<synchronous>, transform_indices = @transform_1, window_bounds = array<i64: 3, 128, 96>}, {pipeline_mode = #tpu.pipeline_mode<synchronous>, transform_indices = @transform_2, window_bounds = array<i64: 1, 96>}, {pipeline_mode = #tpu.pipeline_mode<synchronous>, transform_indices = @transform_3, window_bounds = array<i64: 1, 96>}, {pipeline_mode = #tpu.pipeline_mode<synchronous>, transform_indices = @transform_4, window_bounds = array<i64: 96, 48>}, {pipeline_mode = #tpu.pipeline_mode<synchronous>, transform_indices = @transform_5, window_bounds = array<i64: 1, 48>}, {pipeline_mode = #tpu.pipeline_mode<synchronous>, transform_indices = @transform_6, window_bounds = array<i64: 1, 48>}, {pipeline_mode = #tpu.pipeline_mode<synchronous>, transform_indices = @transform_7, window_bounds = array<i64: 96, 48>}, {pipeline_mode = #tpu.pipeline_mode<synchronous>, transform_indices = @transform_8, window_bounds = array<i64: 1, 48>}, {pipeline_mode = #tpu.pipeline_mode<synchronous>, transform_indices = @transform_9, window_bounds = array<i64: 1, 48>}, {pipeline_mode = #tpu.pipeline_mode<synchronous>, transform_indices = @transform_10, window_bounds = array<i64: 2, 3, 48, 48>}, {pipeline_mode = #tpu.pipeline_mode<synchronous>, transform_indices = @transform_11, window_bounds = array<i64: 2, 1, 48>}, {pipeline_mode = #tpu.pipeline_mode<synchronous>, transform_indices = @transform_12, window_bounds = array<i64: 2, 1, 48>}, {pipeline_mode = #tpu.pipeline_mode<synchronous>, transform_indices = @transform_13, window_bounds = array<i64: 48, 12>}, {pipeline_mode = #tpu.pipeline_mode<synchronous>, transform_indices = @transform_14, window_bounds = array<i64: 48, 12>}, {pipeline_mode = #tpu.pipeline_mode<synchronous>, transform_indices = @transform_15, window_bounds = array<i64: 1, 12>}, {pipeline_mode = #tpu.pipeline_mode<synchronous>, transform_indices = @transform_16, window_bounds = array<i64: 12, 48>}, {pipeline_mode = #tpu.pipeline_mode<synchronous>, transform_indices = @transform_17, window_bounds = array<i64: 12, 48>}, {pipeline_mode = #tpu.pipeline_mode<synchronous>, transform_indices = @transform_18, window_bounds = array<i64: 48, 128>}, {pipeline_mode = #tpu.pipeline_mode<synchronous>, transform_indices = @transform_19, window_bounds = array<i64: 48, 128>}, {pipeline_mode = #tpu.pipeline_mode<synchronous>, transform_indices = @transform_20, window_bounds = array<i64: 1, 128>}, {pipeline_mode = #tpu.pipeline_mode<synchronous>, transform_indices = @transform_21, window_bounds = array<i64: 1, 128>}, {transform_indices = @transform_22, window_bounds = array<i64: 1, 8, 128>}]} {
    %c0 = arith.constant 0 : index
    %c0_0 = arith.constant 0 : index
    %c0_1 = arith.constant 0 : index
    %0 = vector.load %arg1[%c0, %c0_0, %c0_1] : memref<1x8x256xf32, #tpu.memory_space<vmem>>, vector<1x8x256xf32>
    %1 = vector.shape_cast %0 : vector<1x8x256xf32> to vector<8x256xf32>
    %2 = vector.extract_strided_slice %1 {offsets = [0, 0], sizes = [8, 128], strides = [1, 1]} : vector<8x256xf32> to vector<8x128xf32>
    %3 = vector.extract_strided_slice %1 {offsets = [0, 128], sizes = [8, 128], strides = [1, 1]} : vector<8x256xf32> to vector<8x128xf32>
    %4 = tpu.iota {dimensions = array<i32: 0>} : vector<8x128xi32>
    %c0_i32 = arith.constant 0 : i32
    %5 = vector.broadcast %c0_i32 : i32 to vector<8x128xi32>
    %6 = arith.cmpi eq, %4, %5 : vector<8x128xi32>
    %c1_i32 = arith.constant 1 : i32
    %7 = tpu.dynamic_rotate %3 by %c1_i32 dim 0 : vector<8x128xf32>, i32 -> vector<8x128xf32>
    %cst = arith.constant 0.000000e+00 : f32
    %8 = vector.broadcast %cst : f32 to vector<8x128xf32>
    %9 = arith.select %6, %8, %7 : vector<8x128xi1>, vector<8x128xf32>
    %c0_2 = arith.constant 0 : index
    %c0_3 = arith.constant 0 : index
    %c0_4 = arith.constant 0 : index
    %10 = vector.load %arg2[%c0_2, %c0_3, %c0_4] : memref<3x128x96xf32, #tpu.memory_space<vmem>>, vector<1x128x96xf32>
    %11 = vector.shape_cast %10 : vector<1x128x96xf32> to vector<128x96xf32>
    %cst_5 = arith.constant dense<0.000000e+00> : vector<8x96xf32>
    %12 = tpu.matmul %9, %11, %cst_5 {dimension_numbers = #tpu.dot_dimension_numbers<[1], [0], [0], [1], [0, 0, 1, 1], [], []>} : vector<8x128xf32>, vector<128x96xf32>, vector<8x96xf32> -> vector<8x96xf32>
    %c1 = arith.constant 1 : index
    %c0_6 = arith.constant 0 : index
    %c0_7 = arith.constant 0 : index
    %13 = vector.load %arg2[%c1, %c0_6, %c0_7] : memref<3x128x96xf32, #tpu.memory_space<vmem>>, vector<1x128x96xf32>
    %14 = vector.shape_cast %13 : vector<1x128x96xf32> to vector<128x96xf32>
    %cst_8 = arith.constant dense<0.000000e+00> : vector<8x96xf32>
    %15 = tpu.matmul %2, %14, %cst_8 {dimension_numbers = #tpu.dot_dimension_numbers<[1], [0], [0], [1], [0, 0, 1, 1], [], []>} : vector<8x128xf32>, vector<128x96xf32>, vector<8x96xf32> -> vector<8x96xf32>
    %16 = arith.addf %12, %15 : vector<8x96xf32>
    %c2 = arith.constant 2 : index
    %c0_9 = arith.constant 0 : index
    %c0_10 = arith.constant 0 : index
    %17 = vector.load %arg2[%c2, %c0_9, %c0_10] : memref<3x128x96xf32, #tpu.memory_space<vmem>>, vector<1x128x96xf32>
    %18 = vector.shape_cast %17 : vector<1x128x96xf32> to vector<128x96xf32>
    %cst_11 = arith.constant dense<0.000000e+00> : vector<8x96xf32>
    %19 = tpu.matmul %3, %18, %cst_11 {dimension_numbers = #tpu.dot_dimension_numbers<[1], [0], [0], [1], [0, 0, 1, 1], [], []>} : vector<8x128xf32>, vector<128x96xf32>, vector<8x96xf32> -> vector<8x96xf32>
    %20 = arith.addf %16, %19 : vector<8x96xf32>
    %c0_12 = arith.constant 0 : index
    %c0_13 = arith.constant 0 : index
    %21 = vector.load %arg3[%c0_12, %c0_13] : memref<1x96xf32, #tpu.memory_space<vmem>>, vector<1x96xf32>
    %22 = vector.broadcast %21 : vector<1x96xf32> to vector<8x96xf32>
    %23 = arith.mulf %20, %22 : vector<8x96xf32>
    %c0_14 = arith.constant 0 : index
    %c0_15 = arith.constant 0 : index
    %24 = vector.load %arg4[%c0_14, %c0_15] : memref<1x96xf32, #tpu.memory_space<vmem>>, vector<1x96xf32>
    %25 = vector.broadcast %24 : vector<1x96xf32> to vector<8x96xf32>
    %26 = arith.addf %23, %25 : vector<8x96xf32>
    %cst_16 = arith.constant 3.000000e+00 : f32
    %27 = vector.broadcast %cst_16 : f32 to vector<8x96xf32>
    %28 = arith.addf %26, %27 : vector<8x96xf32>
    %cst_17 = arith.constant 0.000000e+00 : f32
    %cst_18 = arith.constant 6.000000e+00 : f32
    %29 = vector.broadcast %cst_17 : f32 to vector<8x96xf32>
    %30 = arith.maximumf %29, %28 : vector<8x96xf32>
    %31 = vector.broadcast %cst_18 : f32 to vector<8x96xf32>
    %32 = arith.minimumf %31, %30 : vector<8x96xf32>
    %33 = arith.mulf %26, %32 : vector<8x96xf32>
    %cst_19 = arith.constant 0.166666672 : f32
    %34 = vector.broadcast %cst_19 : f32 to vector<8x96xf32>
    %35 = arith.mulf %33, %34 : vector<8x96xf32>
    %c0_20 = arith.constant 0 : index
    %c0_21 = arith.constant 0 : index
    %36 = vector.load %arg5[%c0_20, %c0_21] : memref<96x48xf32, #tpu.memory_space<vmem>>, vector<96x48xf32>
    %cst_22 = arith.constant dense<0.000000e+00> : vector<8x48xf32>
    %37 = tpu.matmul %35, %36, %cst_22 {dimension_numbers = #tpu.dot_dimension_numbers<[1], [0], [0], [1], [0, 0, 1, 1], [], []>} : vector<8x96xf32>, vector<96x48xf32>, vector<8x48xf32> -> vector<8x48xf32>
    %c0_23 = arith.constant 0 : index
    %c0_24 = arith.constant 0 : index
    %38 = vector.load %arg6[%c0_23, %c0_24] : memref<1x48xf32, #tpu.memory_space<vmem>>, vector<1x48xf32>
    %39 = vector.broadcast %38 : vector<1x48xf32> to vector<8x48xf32>
    %40 = arith.mulf %37, %39 : vector<8x48xf32>
    %c0_25 = arith.constant 0 : index
    %c0_26 = arith.constant 0 : index
    %41 = vector.load %arg7[%c0_25, %c0_26] : memref<1x48xf32, #tpu.memory_space<vmem>>, vector<1x48xf32>
    %42 = vector.broadcast %41 : vector<1x48xf32> to vector<8x48xf32>
    %43 = arith.addf %40, %42 : vector<8x48xf32>
    %cst_27 = arith.constant 3.000000e+00 : f32
    %44 = vector.broadcast %cst_27 : f32 to vector<8x48xf32>
    %45 = arith.addf %43, %44 : vector<8x48xf32>
    %cst_28 = arith.constant 0.000000e+00 : f32
    %cst_29 = arith.constant 6.000000e+00 : f32
    %46 = vector.broadcast %cst_28 : f32 to vector<8x48xf32>
    %47 = arith.maximumf %46, %45 : vector<8x48xf32>
    %48 = vector.broadcast %cst_29 : f32 to vector<8x48xf32>
    %49 = arith.minimumf %48, %47 : vector<8x48xf32>
    %50 = arith.mulf %43, %49 : vector<8x48xf32>
    %cst_30 = arith.constant 0.166666672 : f32
    %51 = vector.broadcast %cst_30 : f32 to vector<8x48xf32>
    %52 = arith.mulf %50, %51 : vector<8x48xf32>
    %c0_31 = arith.constant 0 : index
    %c0_32 = arith.constant 0 : index
    %53 = vector.load %arg8[%c0_31, %c0_32] : memref<96x48xf32, #tpu.memory_space<vmem>>, vector<96x48xf32>
    %cst_33 = arith.constant dense<0.000000e+00> : vector<8x48xf32>
    %54 = tpu.matmul %35, %53, %cst_33 {dimension_numbers = #tpu.dot_dimension_numbers<[1], [0], [0], [1], [0, 0, 1, 1], [], []>} : vector<8x96xf32>, vector<96x48xf32>, vector<8x48xf32> -> vector<8x48xf32>
    %c0_34 = arith.constant 0 : index
    %c0_35 = arith.constant 0 : index
    %55 = vector.load %arg9[%c0_34, %c0_35] : memref<1x48xf32, #tpu.memory_space<vmem>>, vector<1x48xf32>
    %56 = vector.broadcast %55 : vector<1x48xf32> to vector<8x48xf32>
    %57 = arith.mulf %54, %56 : vector<8x48xf32>
    %c0_36 = arith.constant 0 : index
    %c0_37 = arith.constant 0 : index
    %58 = vector.load %arg10[%c0_36, %c0_37] : memref<1x48xf32, #tpu.memory_space<vmem>>, vector<1x48xf32>
    %59 = vector.broadcast %58 : vector<1x48xf32> to vector<8x48xf32>
    %60 = arith.addf %57, %59 : vector<8x48xf32>
    %cst_38 = arith.constant 3.000000e+00 : f32
    %61 = vector.broadcast %cst_38 : f32 to vector<8x48xf32>
    %62 = arith.addf %60, %61 : vector<8x48xf32>
    %cst_39 = arith.constant 0.000000e+00 : f32
    %cst_40 = arith.constant 6.000000e+00 : f32
    %63 = vector.broadcast %cst_39 : f32 to vector<8x48xf32>
    %64 = arith.maximumf %63, %62 : vector<8x48xf32>
    %65 = vector.broadcast %cst_40 : f32 to vector<8x48xf32>
    %66 = arith.minimumf %65, %64 : vector<8x48xf32>
    %67 = arith.mulf %60, %66 : vector<8x48xf32>
    %cst_41 = arith.constant 0.166666672 : f32
    %68 = vector.broadcast %cst_41 : f32 to vector<8x48xf32>
    %69 = arith.mulf %67, %68 : vector<8x48xf32>
    %70 = tpu.iota {dimensions = array<i32: 0>} : vector<8x48xi32>
    %c0_i32_42 = arith.constant 0 : i32
    %71 = vector.broadcast %c0_i32_42 : i32 to vector<8x48xi32>
    %72 = arith.cmpi eq, %70, %71 : vector<8x48xi32>
    %c1_i32_43 = arith.constant 1 : i32
    %73 = tpu.dynamic_rotate %69 by %c1_i32_43 dim 0 : vector<8x48xf32>, i32 -> vector<8x48xf32>
    %cst_44 = arith.constant 0.000000e+00 : f32
    %74 = vector.broadcast %cst_44 : f32 to vector<8x48xf32>
    %75 = arith.select %72, %74, %73 : vector<8x48xi1>, vector<8x48xf32>
    %c7_i32 = arith.constant 7 : i32
    %76 = vector.broadcast %c7_i32 : i32 to vector<8x48xi32>
    %77 = arith.cmpi eq, %70, %76 : vector<8x48xi32>
    %c7_i32_45 = arith.constant 7 : i32
    %78 = tpu.dynamic_rotate %69 by %c7_i32_45 dim 0 : vector<8x48xf32>, i32 -> vector<8x48xf32>
    %cst_46 = arith.constant 0.000000e+00 : f32
    %79 = vector.broadcast %cst_46 : f32 to vector<8x48xf32>
    %80 = arith.select %77, %79, %78 : vector<8x48xi1>, vector<8x48xf32>
    %c0_47 = arith.constant 0 : index
    %c0_48 = arith.constant 0 : index
    %c0_49 = arith.constant 0 : index
    %c0_50 = arith.constant 0 : index
    %81 = vector.load %arg11[%c0_47, %c0_48, %c0_49, %c0_50] : memref<2x3x48x48xf32, #tpu.memory_space<vmem>>, vector<1x1x48x48xf32>
    %82 = vector.shape_cast %81 : vector<1x1x48x48xf32> to vector<48x48xf32>
    %cst_51 = arith.constant dense<0.000000e+00> : vector<8x48xf32>
    %83 = tpu.matmul %75, %82, %cst_51 {dimension_numbers = #tpu.dot_dimension_numbers<[1], [0], [0], [1], [0, 0, 1, 1], [], []>} : vector<8x48xf32>, vector<48x48xf32>, vector<8x48xf32> -> vector<8x48xf32>
    %c0_52 = arith.constant 0 : index
    %c1_53 = arith.constant 1 : index
    %c0_54 = arith.constant 0 : index
    %c0_55 = arith.constant 0 : index
    %84 = vector.load %arg11[%c0_52, %c1_53, %c0_54, %c0_55] : memref<2x3x48x48xf32, #tpu.memory_space<vmem>>, vector<1x1x48x48xf32>
    %85 = vector.shape_cast %84 : vector<1x1x48x48xf32> to vector<48x48xf32>
    %cst_56 = arith.constant dense<0.000000e+00> : vector<8x48xf32>
    %86 = tpu.matmul %69, %85, %cst_56 {dimension_numbers = #tpu.dot_dimension_numbers<[1], [0], [0], [1], [0, 0, 1, 1], [], []>} : vector<8x48xf32>, vector<48x48xf32>, vector<8x48xf32> -> vector<8x48xf32>
    %87 = arith.addf %83, %86 : vector<8x48xf32>
    %c0_57 = arith.constant 0 : index
    %c2_58 = arith.constant 2 : index
    %c0_59 = arith.constant 0 : index
    %c0_60 = arith.constant 0 : index
    %88 = vector.load %arg11[%c0_57, %c2_58, %c0_59, %c0_60] : memref<2x3x48x48xf32, #tpu.memory_space<vmem>>, vector<1x1x48x48xf32>
    %89 = vector.shape_cast %88 : vector<1x1x48x48xf32> to vector<48x48xf32>
    %cst_61 = arith.constant dense<0.000000e+00> : vector<8x48xf32>
    %90 = tpu.matmul %80, %89, %cst_61 {dimension_numbers = #tpu.dot_dimension_numbers<[1], [0], [0], [1], [0, 0, 1, 1], [], []>} : vector<8x48xf32>, vector<48x48xf32>, vector<8x48xf32> -> vector<8x48xf32>
    %91 = arith.addf %87, %90 : vector<8x48xf32>
    %c0_62 = arith.constant 0 : index
    %c0_63 = arith.constant 0 : index
    %c0_64 = arith.constant 0 : index
    %92 = vector.load %arg12[%c0_62, %c0_63, %c0_64] : memref<2x1x48xf32, #tpu.memory_space<vmem>>, vector<1x1x48xf32>
    %93 = vector.shape_cast %92 : vector<1x1x48xf32> to vector<1x48xf32>
    %94 = vector.broadcast %93 : vector<1x48xf32> to vector<8x48xf32>
    %95 = arith.mulf %91, %94 : vector<8x48xf32>
    %c0_65 = arith.constant 0 : index
    %c0_66 = arith.constant 0 : index
    %c0_67 = arith.constant 0 : index
    %96 = vector.load %arg13[%c0_65, %c0_66, %c0_67] : memref<2x1x48xf32, #tpu.memory_space<vmem>>, vector<1x1x48xf32>
    %97 = vector.shape_cast %96 : vector<1x1x48xf32> to vector<1x48xf32>
    %98 = vector.broadcast %97 : vector<1x48xf32> to vector<8x48xf32>
    %99 = arith.addf %95, %98 : vector<8x48xf32>
    %cst_68 = arith.constant 3.000000e+00 : f32
    %100 = vector.broadcast %cst_68 : f32 to vector<8x48xf32>
    %101 = arith.addf %99, %100 : vector<8x48xf32>
    %cst_69 = arith.constant 0.000000e+00 : f32
    %cst_70 = arith.constant 6.000000e+00 : f32
    %102 = vector.broadcast %cst_69 : f32 to vector<8x48xf32>
    %103 = arith.maximumf %102, %101 : vector<8x48xf32>
    %104 = vector.broadcast %cst_70 : f32 to vector<8x48xf32>
    %105 = arith.minimumf %104, %103 : vector<8x48xf32>
    %106 = arith.mulf %99, %105 : vector<8x48xf32>
    %cst_71 = arith.constant 0.166666672 : f32
    %107 = vector.broadcast %cst_71 : f32 to vector<8x48xf32>
    %108 = arith.mulf %106, %107 : vector<8x48xf32>
    %109 = arith.addf %69, %108 : vector<8x48xf32>
    %c0_i32_72 = arith.constant 0 : i32
    %110 = vector.broadcast %c0_i32_72 : i32 to vector<8x48xi32>
    %111 = arith.cmpi eq, %70, %110 : vector<8x48xi32>
    %c1_i32_73 = arith.constant 1 : i32
    %112 = tpu.dynamic_rotate %109 by %c1_i32_73 dim 0 : vector<8x48xf32>, i32 -> vector<8x48xf32>
    %cst_74 = arith.constant 0.000000e+00 : f32
    %113 = vector.broadcast %cst_74 : f32 to vector<8x48xf32>
    %114 = arith.select %111, %113, %112 : vector<8x48xi1>, vector<8x48xf32>
    %c7_i32_75 = arith.constant 7 : i32
    %115 = vector.broadcast %c7_i32_75 : i32 to vector<8x48xi32>
    %116 = arith.cmpi eq, %70, %115 : vector<8x48xi32>
    %c7_i32_76 = arith.constant 7 : i32
    %117 = tpu.dynamic_rotate %109 by %c7_i32_76 dim 0 : vector<8x48xf32>, i32 -> vector<8x48xf32>
    %cst_77 = arith.constant 0.000000e+00 : f32
    %118 = vector.broadcast %cst_77 : f32 to vector<8x48xf32>
    %119 = arith.select %116, %118, %117 : vector<8x48xi1>, vector<8x48xf32>
    %c1_78 = arith.constant 1 : index
    %c0_79 = arith.constant 0 : index
    %c0_80 = arith.constant 0 : index
    %c0_81 = arith.constant 0 : index
    %120 = vector.load %arg11[%c1_78, %c0_79, %c0_80, %c0_81] : memref<2x3x48x48xf32, #tpu.memory_space<vmem>>, vector<1x1x48x48xf32>
    %121 = vector.shape_cast %120 : vector<1x1x48x48xf32> to vector<48x48xf32>
    %cst_82 = arith.constant dense<0.000000e+00> : vector<8x48xf32>
    %122 = tpu.matmul %114, %121, %cst_82 {dimension_numbers = #tpu.dot_dimension_numbers<[1], [0], [0], [1], [0, 0, 1, 1], [], []>} : vector<8x48xf32>, vector<48x48xf32>, vector<8x48xf32> -> vector<8x48xf32>
    %c1_83 = arith.constant 1 : index
    %c1_84 = arith.constant 1 : index
    %c0_85 = arith.constant 0 : index
    %c0_86 = arith.constant 0 : index
    %123 = vector.load %arg11[%c1_83, %c1_84, %c0_85, %c0_86] : memref<2x3x48x48xf32, #tpu.memory_space<vmem>>, vector<1x1x48x48xf32>
    %124 = vector.shape_cast %123 : vector<1x1x48x48xf32> to vector<48x48xf32>
    %cst_87 = arith.constant dense<0.000000e+00> : vector<8x48xf32>
    %125 = tpu.matmul %109, %124, %cst_87 {dimension_numbers = #tpu.dot_dimension_numbers<[1], [0], [0], [1], [0, 0, 1, 1], [], []>} : vector<8x48xf32>, vector<48x48xf32>, vector<8x48xf32> -> vector<8x48xf32>
    %126 = arith.addf %122, %125 : vector<8x48xf32>
    %c1_88 = arith.constant 1 : index
    %c2_89 = arith.constant 2 : index
    %c0_90 = arith.constant 0 : index
    %c0_91 = arith.constant 0 : index
    %127 = vector.load %arg11[%c1_88, %c2_89, %c0_90, %c0_91] : memref<2x3x48x48xf32, #tpu.memory_space<vmem>>, vector<1x1x48x48xf32>
    %128 = vector.shape_cast %127 : vector<1x1x48x48xf32> to vector<48x48xf32>
    %cst_92 = arith.constant dense<0.000000e+00> : vector<8x48xf32>
    %129 = tpu.matmul %119, %128, %cst_92 {dimension_numbers = #tpu.dot_dimension_numbers<[1], [0], [0], [1], [0, 0, 1, 1], [], []>} : vector<8x48xf32>, vector<48x48xf32>, vector<8x48xf32> -> vector<8x48xf32>
    %130 = arith.addf %126, %129 : vector<8x48xf32>
    %c1_93 = arith.constant 1 : index
    %c0_94 = arith.constant 0 : index
    %c0_95 = arith.constant 0 : index
    %131 = vector.load %arg12[%c1_93, %c0_94, %c0_95] : memref<2x1x48xf32, #tpu.memory_space<vmem>>, vector<1x1x48xf32>
    %132 = vector.shape_cast %131 : vector<1x1x48xf32> to vector<1x48xf32>
    %133 = vector.broadcast %132 : vector<1x48xf32> to vector<8x48xf32>
    %134 = arith.mulf %130, %133 : vector<8x48xf32>
    %c1_96 = arith.constant 1 : index
    %c0_97 = arith.constant 0 : index
    %c0_98 = arith.constant 0 : index
    %135 = vector.load %arg13[%c1_96, %c0_97, %c0_98] : memref<2x1x48xf32, #tpu.memory_space<vmem>>, vector<1x1x48xf32>
    %136 = vector.shape_cast %135 : vector<1x1x48xf32> to vector<1x48xf32>
    %137 = vector.broadcast %136 : vector<1x48xf32> to vector<8x48xf32>
    %138 = arith.addf %134, %137 : vector<8x48xf32>
    %cst_99 = arith.constant 3.000000e+00 : f32
    %139 = vector.broadcast %cst_99 : f32 to vector<8x48xf32>
    %140 = arith.addf %138, %139 : vector<8x48xf32>
    %cst_100 = arith.constant 0.000000e+00 : f32
    %cst_101 = arith.constant 6.000000e+00 : f32
    %141 = vector.broadcast %cst_100 : f32 to vector<8x48xf32>
    %142 = arith.maximumf %141, %140 : vector<8x48xf32>
    %143 = vector.broadcast %cst_101 : f32 to vector<8x48xf32>
    %144 = arith.minimumf %143, %142 : vector<8x48xf32>
    %145 = arith.mulf %138, %144 : vector<8x48xf32>
    %cst_102 = arith.constant 0.166666672 : f32
    %146 = vector.broadcast %cst_102 : f32 to vector<8x48xf32>
    %147 = arith.mulf %145, %146 : vector<8x48xf32>
    %148 = arith.addf %109, %147 : vector<8x48xf32>
    %cst_103 = arith.constant dense<0.000000e+00> : vector<48xf32>
    %149 = vector.multi_reduction <add>, %52, %cst_103 [0] : vector<8x48xf32> to vector<48xf32>
    %150 = vector.shape_cast %149 : vector<48xf32> to vector<1x48xf32>
    %cst_104 = arith.constant dense<0.000000e+00> : vector<48xf32>
    %151 = vector.multi_reduction <add>, %148, %cst_104 [0] : vector<8x48xf32> to vector<48xf32>
    %152 = vector.shape_cast %151 : vector<48xf32> to vector<1x48xf32>
    %c0_105 = arith.constant 0 : index
    %c0_106 = arith.constant 0 : index
    %153 = vector.load %arg14[%c0_105, %c0_106] : memref<48x12xf32, #tpu.memory_space<vmem>>, vector<48x12xf32>
    %cst_107 = arith.constant dense<0.000000e+00> : vector<1x12xf32>
    %154 = tpu.matmul %150, %153, %cst_107 {dimension_numbers = #tpu.dot_dimension_numbers<[1], [0], [0], [1], [0, 0, 1, 1], [], []>} : vector<1x48xf32>, vector<48x12xf32>, vector<1x12xf32> -> vector<1x12xf32>
    %c0_108 = arith.constant 0 : index
    %c0_109 = arith.constant 0 : index
    %155 = vector.load %arg15[%c0_108, %c0_109] : memref<48x12xf32, #tpu.memory_space<vmem>>, vector<48x12xf32>
    %cst_110 = arith.constant dense<0.000000e+00> : vector<1x12xf32>
    %156 = tpu.matmul %152, %155, %cst_110 {dimension_numbers = #tpu.dot_dimension_numbers<[1], [0], [0], [1], [0, 0, 1, 1], [], []>} : vector<1x48xf32>, vector<48x12xf32>, vector<1x12xf32> -> vector<1x12xf32>
    %157 = arith.addf %154, %156 : vector<1x12xf32>
    %c0_111 = arith.constant 0 : index
    %c0_112 = arith.constant 0 : index
    %158 = vector.load %arg16[%c0_111, %c0_112] : memref<1x12xf32, #tpu.memory_space<vmem>>, vector<1x12xf32>
    %159 = arith.addf %157, %158 : vector<1x12xf32>
    %cst_113 = arith.constant 3.000000e+00 : f32
    %160 = vector.broadcast %cst_113 : f32 to vector<1x12xf32>
    %161 = arith.addf %159, %160 : vector<1x12xf32>
    %cst_114 = arith.constant 0.000000e+00 : f32
    %cst_115 = arith.constant 6.000000e+00 : f32
    %162 = vector.broadcast %cst_114 : f32 to vector<1x12xf32>
    %163 = arith.maximumf %162, %161 : vector<1x12xf32>
    %164 = vector.broadcast %cst_115 : f32 to vector<1x12xf32>
    %165 = arith.minimumf %164, %163 : vector<1x12xf32>
    %cst_116 = arith.constant 0.166666672 : f32
    %166 = vector.broadcast %cst_116 : f32 to vector<1x12xf32>
    %167 = arith.mulf %165, %166 : vector<1x12xf32>
    %c0_117 = arith.constant 0 : index
    %c0_118 = arith.constant 0 : index
    %168 = vector.load %arg17[%c0_117, %c0_118] : memref<12x48xf32, #tpu.memory_space<vmem>>, vector<12x48xf32>
    %cst_119 = arith.constant dense<0.000000e+00> : vector<1x48xf32>
    %169 = tpu.matmul %167, %168, %cst_119 {dimension_numbers = #tpu.dot_dimension_numbers<[1], [0], [0], [1], [0, 0, 1, 1], [], []>} : vector<1x12xf32>, vector<12x48xf32>, vector<1x48xf32> -> vector<1x48xf32>
    %170 = vector.broadcast %169 : vector<1x48xf32> to vector<8x48xf32>
    %171 = arith.mulf %52, %170 : vector<8x48xf32>
    %c0_120 = arith.constant 0 : index
    %c0_121 = arith.constant 0 : index
    %172 = vector.load %arg18[%c0_120, %c0_121] : memref<12x48xf32, #tpu.memory_space<vmem>>, vector<12x48xf32>
    %cst_122 = arith.constant dense<0.000000e+00> : vector<1x48xf32>
    %173 = tpu.matmul %167, %172, %cst_122 {dimension_numbers = #tpu.dot_dimension_numbers<[1], [0], [0], [1], [0, 0, 1, 1], [], []>} : vector<1x12xf32>, vector<12x48xf32>, vector<1x48xf32> -> vector<1x48xf32>
    %174 = vector.broadcast %173 : vector<1x48xf32> to vector<8x48xf32>
    %175 = arith.mulf %148, %174 : vector<8x48xf32>
    %c0_123 = arith.constant 0 : index
    %c0_124 = arith.constant 0 : index
    %176 = vector.load %arg19[%c0_123, %c0_124] : memref<48x128xf32, #tpu.memory_space<vmem>>, vector<48x128xf32>
    %cst_125 = arith.constant dense<0.000000e+00> : vector<8x128xf32>
    %177 = tpu.matmul %171, %176, %cst_125 {dimension_numbers = #tpu.dot_dimension_numbers<[1], [0], [0], [1], [0, 0, 1, 1], [], []>} : vector<8x48xf32>, vector<48x128xf32>, vector<8x128xf32> -> vector<8x128xf32>
    %c0_126 = arith.constant 0 : index
    %c0_127 = arith.constant 0 : index
    %178 = vector.load %arg20[%c0_126, %c0_127] : memref<48x128xf32, #tpu.memory_space<vmem>>, vector<48x128xf32>
    %cst_128 = arith.constant dense<0.000000e+00> : vector<8x128xf32>
    %179 = tpu.matmul %175, %178, %cst_128 {dimension_numbers = #tpu.dot_dimension_numbers<[1], [0], [0], [1], [0, 0, 1, 1], [], []>} : vector<8x48xf32>, vector<48x128xf32>, vector<8x128xf32> -> vector<8x128xf32>
    %180 = arith.addf %177, %179 : vector<8x128xf32>
    %c0_129 = arith.constant 0 : index
    %c0_130 = arith.constant 0 : index
    %181 = vector.load %arg21[%c0_129, %c0_130] : memref<1x128xf32, #tpu.memory_space<vmem>>, vector<1x128xf32>
    %182 = vector.broadcast %181 : vector<1x128xf32> to vector<8x128xf32>
    %183 = arith.mulf %180, %182 : vector<8x128xf32>
    %c0_131 = arith.constant 0 : index
    %c0_132 = arith.constant 0 : index
    %184 = vector.load %arg22[%c0_131, %c0_132] : memref<1x128xf32, #tpu.memory_space<vmem>>, vector<1x128xf32>
    %185 = vector.broadcast %184 : vector<1x128xf32> to vector<8x128xf32>
    %186 = arith.addf %183, %185 : vector<8x128xf32>
    %cst_133 = arith.constant 3.000000e+00 : f32
    %187 = vector.broadcast %cst_133 : f32 to vector<8x128xf32>
    %188 = arith.addf %186, %187 : vector<8x128xf32>
    %cst_134 = arith.constant 0.000000e+00 : f32
    %cst_135 = arith.constant 6.000000e+00 : f32
    %189 = vector.broadcast %cst_134 : f32 to vector<8x128xf32>
    %190 = arith.maximumf %189, %188 : vector<8x128xf32>
    %191 = vector.broadcast %cst_135 : f32 to vector<8x128xf32>
    %192 = arith.minimumf %191, %190 : vector<8x128xf32>
    %193 = arith.mulf %186, %192 : vector<8x128xf32>
    %cst_136 = arith.constant 0.166666672 : f32
    %194 = vector.broadcast %cst_136 : f32 to vector<8x128xf32>
    %195 = arith.mulf %193, %194 : vector<8x128xf32>
    %c0_137 = arith.constant 0 : index
    %c0_138 = arith.constant 0 : index
    %c0_139 = arith.constant 0 : index
    %196 = vector.load %arg23[%c0_137, %c0_138, %c0_139] : memref<1x8x128xf32, #tpu.memory_space<vmem>>, vector<1x8x128xf32>
    %197 = vector.shape_cast %196 : vector<1x8x128xf32> to vector<8x128xf32>
    %198 = vector.shape_cast %195 : vector<8x128xf32> to vector<1x8x128xf32>
    tpu.vector_store %arg23[%c0_137, %c0_138, %c0_139], %198 {strides = array<i32>} : memref<1x8x128xf32, #tpu.memory_space<vmem>>, vector<1x8x128xf32>,
    return
  }
  func.func @transform_0(%arg0: i32) -> (i32, i32, i32) {
    %c0_i32 = arith.constant 0 : i32
    %c0_i32_0 = arith.constant 0 : i32
    %c0_i32_1 = arith.constant 0 : i32
    return %arg0, %c0_i32, %c0_i32_0 : i32, i32, i32
  }
  func.func @transform_1(%arg0: i32) -> (i32, i32, i32) {
    %c0_i32 = arith.constant 0 : i32
    %c0_i32_0 = arith.constant 0 : i32
    %c0_i32_1 = arith.constant 0 : i32
    %c0_i32_2 = arith.constant 0 : i32
    return %c0_i32, %c0_i32_0, %c0_i32_1 : i32, i32, i32
  }
  func.func @transform_2(%arg0: i32) -> (i32, i32) {
    %c0_i32 = arith.constant 0 : i32
    %c0_i32_0 = arith.constant 0 : i32
    %c0_i32_1 = arith.constant 0 : i32
    return %c0_i32, %c0_i32_0 : i32, i32
  }
  func.func @transform_3(%arg0: i32) -> (i32, i32) {
    %c0_i32 = arith.constant 0 : i32
    %c0_i32_0 = arith.constant 0 : i32
    %c0_i32_1 = arith.constant 0 : i32
    return %c0_i32, %c0_i32_0 : i32, i32
  }
  func.func @transform_4(%arg0: i32) -> (i32, i32) {
    %c0_i32 = arith.constant 0 : i32
    %c0_i32_0 = arith.constant 0 : i32
    %c0_i32_1 = arith.constant 0 : i32
    return %c0_i32, %c0_i32_0 : i32, i32
  }
  func.func @transform_5(%arg0: i32) -> (i32, i32) {
    %c0_i32 = arith.constant 0 : i32
    %c0_i32_0 = arith.constant 0 : i32
    %c0_i32_1 = arith.constant 0 : i32
    return %c0_i32, %c0_i32_0 : i32, i32
  }
  func.func @transform_6(%arg0: i32) -> (i32, i32) {
    %c0_i32 = arith.constant 0 : i32
    %c0_i32_0 = arith.constant 0 : i32
    %c0_i32_1 = arith.constant 0 : i32
    return %c0_i32, %c0_i32_0 : i32, i32
  }
  func.func @transform_7(%arg0: i32) -> (i32, i32) {
    %c0_i32 = arith.constant 0 : i32
    %c0_i32_0 = arith.constant 0 : i32
    %c0_i32_1 = arith.constant 0 : i32
    return %c0_i32, %c0_i32_0 : i32, i32
  }
  func.func @transform_8(%arg0: i32) -> (i32, i32) {
    %c0_i32 = arith.constant 0 : i32
    %c0_i32_0 = arith.constant 0 : i32
    %c0_i32_1 = arith.constant 0 : i32
    return %c0_i32, %c0_i32_0 : i32, i32
  }
  func.func @transform_9(%arg0: i32) -> (i32, i32) {
    %c0_i32 = arith.constant 0 : i32
    %c0_i32_0 = arith.constant 0 : i32
    %c0_i32_1 = arith.constant 0 : i32
    return %c0_i32, %c0_i32_0 : i32, i32
  }
  func.func @transform_10(%arg0: i32) -> (i32, i32, i32, i32) {
    %c0_i32 = arith.constant 0 : i32
    %c0_i32_0 = arith.constant 0 : i32
    %c0_i32_1 = arith.constant 0 : i32
    %c0_i32_2 = arith.constant 0 : i32
    %c0_i32_3 = arith.constant 0 : i32
    return %c0_i32, %c0_i32_0, %c0_i32_1, %c0_i32_2 : i32, i32, i32, i32
  }
  func.func @transform_11(%arg0: i32) -> (i32, i32, i32) {
    %c0_i32 = arith.constant 0 : i32
    %c0_i32_0 = arith.constant 0 : i32
    %c0_i32_1 = arith.constant 0 : i32
    %c0_i32_2 = arith.constant 0 : i32
    return %c0_i32, %c0_i32_0, %c0_i32_1 : i32, i32, i32
  }
  func.func @transform_12(%arg0: i32) -> (i32, i32, i32) {
    %c0_i32 = arith.constant 0 : i32
    %c0_i32_0 = arith.constant 0 : i32
    %c0_i32_1 = arith.constant 0 : i32
    %c0_i32_2 = arith.constant 0 : i32
    return %c0_i32, %c0_i32_0, %c0_i32_1 : i32, i32, i32
  }
  func.func @transform_13(%arg0: i32) -> (i32, i32) {
    %c0_i32 = arith.constant 0 : i32
    %c0_i32_0 = arith.constant 0 : i32
    %c0_i32_1 = arith.constant 0 : i32
    return %c0_i32, %c0_i32_0 : i32, i32
  }
  func.func @transform_14(%arg0: i32) -> (i32, i32) {
    %c0_i32 = arith.constant 0 : i32
    %c0_i32_0 = arith.constant 0 : i32
    %c0_i32_1 = arith.constant 0 : i32
    return %c0_i32, %c0_i32_0 : i32, i32
  }
  func.func @transform_15(%arg0: i32) -> (i32, i32) {
    %c0_i32 = arith.constant 0 : i32
    %c0_i32_0 = arith.constant 0 : i32
    %c0_i32_1 = arith.constant 0 : i32
    return %c0_i32, %c0_i32_0 : i32, i32
  }
  func.func @transform_16(%arg0: i32) -> (i32, i32) {
    %c0_i32 = arith.constant 0 : i32
    %c0_i32_0 = arith.constant 0 : i32
    %c0_i32_1 = arith.constant 0 : i32
    return %c0_i32, %c0_i32_0 : i32, i32
  }
  func.func @transform_17(%arg0: i32) -> (i32, i32) {
    %c0_i32 = arith.constant 0 : i32
    %c0_i32_0 = arith.constant 0 : i32
    %c0_i32_1 = arith.constant 0 : i32
    return %c0_i32, %c0_i32_0 : i32, i32
  }
  func.func @transform_18(%arg0: i32) -> (i32, i32) {
    %c0_i32 = arith.constant 0 : i32
    %c0_i32_0 = arith.constant 0 : i32
    %c0_i32_1 = arith.constant 0 : i32
    return %c0_i32, %c0_i32_0 : i32, i32
  }
  func.func @transform_19(%arg0: i32) -> (i32, i32) {
    %c0_i32 = arith.constant 0 : i32
    %c0_i32_0 = arith.constant 0 : i32
    %c0_i32_1 = arith.constant 0 : i32
    return %c0_i32, %c0_i32_0 : i32, i32
  }
  func.func @transform_20(%arg0: i32) -> (i32, i32) {
    %c0_i32 = arith.constant 0 : i32
    %c0_i32_0 = arith.constant 0 : i32
    %c0_i32_1 = arith.constant 0 : i32
    return %c0_i32, %c0_i32_0 : i32, i32
  }
  func.func @transform_21(%arg0: i32) -> (i32, i32) {
    %c0_i32 = arith.constant 0 : i32
    %c0_i32_0 = arith.constant 0 : i32
    %c0_i32_1 = arith.constant 0 : i32
    return %c0_i32, %c0_i32_0 : i32, i32
  }
  func.func @transform_22(%arg0: i32) -> (i32, i32, i32) {
    %c0_i32 = arith.constant 0 : i32
    %c0_i32_0 = arith.constant 0 : i32
    %c0_i32_1 = arith.constant 0 : i32
    return %arg0, %c0_i32, %c0_i32_0 : i32, i32, i32
  }
}

</mosaic_0001>

<bundles_post_ra>
// kernel: csp_res_stage_forward.1
= control target key start
LH: loop header
LB: loop body
LE: loop exit
PB: predicated region body
PF: predicated region fallthrough
CT: control target
= control target key end

     0   :  { %s3860_s0 = inlined_call_operand.vmem [shape: f32[2,8,256], index: 0, kind: input, shape index: {}]   ;;  %s3861_s1 = inlined_call_operand.vmem [shape: f32[3,128,96], index: 1, kind: input, shape index: {}]   ;;  %s3862_s2 = inlined_call_operand.vmem [shape: f32[1,96], index: 2, kind: input, shape index: {}]   ;;  %s3863_s3 = inlined_call_operand.vmem [shape: f32[1,96], index: 3, kind: input, shape index: {}]   ;;  %s3864_s4 = inlined_call_operand.vmem [shape: f32[96,48], index: 4, kind: input, shape index: {}]   ;;  %s3865_s5 = inlined_call_operand.vmem [shape: f32[1,48], index: 5, kind: input, shape index: {}]   ;;  %s3866_s6 = inlined_call_operand.vmem [shape: f32[1,48], index: 6, kind: input, shape index: {}]   ;;  %s3867_s7 = inlined_call_operand.vmem [shape: f32[96,48], index: 7, kind: input, shape index: {}]   ;;  %s3868_s8 = inlined_call_operand.vmem [shape: f32[1,48], index: 8, kind: input, shape index: {}]   ;;  %s3869_s9 = inlined_call_operand.vmem [shape: f32[1,48], index: 9, kind: input, shape index: {}]   ;;  %s3870_s10 = inlined_call_operand.vmem [shape: f32[2,3,48,48], index: 10, kind: input, shape index: {}]   ;;  %s3871_s11 = inlined_call_operand.vmem [shape: f32[2,1,48], index: 11, kind: input, shape index: {}]   ;;  %s3872_s12 = inlined_call_operand.vmem [shape: f32[2,1,48], index: 12, kind: input, shape index: {}]   ;;  %s3873_s13 = inlined_call_operand.vmem [shape: f32[48,12], index: 13, kind: input, shape index: {}]   ;;  %s3874_s14 = inlined_call_operand.vmem [shape: f32[48,12], index: 14, kind: input, shape index: {}]   ;;  %s3875_s15 = inlined_call_operand.vmem [shape: f32[1,12], index: 15, kind: input, shape index: {}]   ;;  %s3876_s16 = inlined_call_operand.vmem [shape: f32[12,48], index: 16, kind: input, shape index: {}]   ;;  %s3877_s17 = inlined_call_operand.vmem [shape: f32[12,48], index: 17, kind: input, shape index: {}]   ;;  %s3878_s18 = inlined_call_operand.vmem [shape: f32[48,128], index: 18, kind: input, shape index: {}]   ;;  %s3879_s19 = inlined_call_operand.vmem [shape: f32[48,128], index: 19, kind: input, shape index: {}]   ;;  %s3880_s20 = inlined_call_operand.vmem [shape: f32[1,128], index: 20, kind: input, shape index: {}]   ;;  %s3881_s21 = inlined_call_operand.vmem [shape: f32[1,128], index: 21, kind: input, shape index: {}]   ;;  %s3882_s22 = inlined_call_operand.vmem [shape: f32[2,8,128], index: 22, kind: output, shape index: {}]  }
   0x1   :  { %3885 = sst [smem:[#allocation2_spill]] %s3860_s0 }
   0x2   :  { %3886 = sst [smem:[#allocation3_spill]] %s3861_s1 }
   0x3   :  { %3887 = sst [smem:[#allocation4_spill]] %s3862_s2 }
   0x4   :  { %3888 = sst [smem:[#allocation5_spill]] %s3863_s3  ;;  %s3234_s3 = smov 0  }
   0x5   :  { %3889 = sst [smem:[#allocation6_spill]] %s3864_s4 }
   0x6   :  { %3890 = sst [smem:[#allocation7_spill]] %s3865_s5 }
   0x7   :  { %3891 = sst [smem:[#allocation8_spill]] %s3866_s6 }
   0x8 LB: > { %s2294_s28 = sadd.s32 4294967295, %s3113_s3   ;;  %p2298_p0 = scmp.ge.s32.totalorder %s3113_s3, 1  ;;  %s3113_s3 = sphi %s3234_s3, %s32_s3  }
   0x9   : > { %p612_p1 = scmp.lt.s32.totalorder %s3113_s3, 3 }
   0xb   : > { %p613_p2 = pnand %p2298_p0, %p612_p1 }
   0xc   : > { %s3892_s4 = sld [smem:[#allocation3_spill]] (!%p613_p2)  ;;  %v3115_v3 = vmov (!%p613_p2), 0.0|0.0   ;;  %vm3116_vm0 = vmmov (!%p613_p2), 0   ;;  %v3117_v6 = vmov (!%p613_p2), 0.0   ;;  %p673_p3 = scmp.lt.s32.totalorder (!%p613_p2), %s2294_s28, 1  ;;  %v684_v56 = vlaneseq (!%p613_p2) }
   0xd   : > { %616 = sbr.rel (%p613_p2) target bundleno = 1788 (0x6fc), region = 108  ;;  %2875 = vmatprep.subr.bf16.mxu0 (!%p613_p2), %v3115_v3  ;;  %2584 = vmatprep.mubr.msk.f32.mxu0 (!%p613_p2), %vm3116_vm0, %v3117_v6  ;;  %s3893_s0 = sld [smem:[#allocation6_spill]] (!%p613_p2)  ;;  %vm983_vm3 = vcmask (!%p613_p2), 785408   ;;  %vm1199_vm4 = vcmask (!%p613_p2), 392192   ;;  %vm1902_vm6 = vcmask (!%p613_p2), 1043456   ;;  %vm3118_vm7 = vmmov (!%p613_p2), 1  }
   0xe   : > { %2947 = vmatprep.subr.bf16.mxu1 (!%p613_p2), %v3115_v3  ;;  %2681 = vmatprep.mubr.msk.f32.mxu1 (!%p613_p2), %vm3116_vm0, %v3117_v6  ;;  %s3894_s30 = sld [smem:[#allocation2_spill]] (!%p613_p2)  ;;  %v3394_v60 = vshrl.u32 (!%p613_p2), %v684_v56, 7  ;;  %s3895_s25 = sld [smem:[#allocation4_spill]] (!%p613_p2)  ;;  %v1085_v56 = vld [vmem:[%s3867_s7 + $0x38] sm:$0xff] (!%p613_p2)  ;;  %vm3057_vm8 = vmpackc.low (!%p613_p2), %vm1902_vm6, %vm3118_vm7  ;;  %vm1898_vm9 = vcmask (!%p613_p2), 97280  }
   0xf   : > { %s3897_s6 = sld [smem:[#allocation7_spill]] (!%p613_p2) }
  0x10   : > { %vm686_vm1 = vcmp.eq.s32.totalorder (!%p613_p2), %v3394_v60, 0  ;;  %vm1183_vm5 = vcmp.eq.s32.totalorder (!%p613_p2), %v3394_v60, 7 }
  0x11   : > { %vm2318_vm2 = vmneg (!%p613_p2), %vm686_vm1 }
  0x12   : > { %v2302_v0 = vld [vmem:[%s3892_s4 + $0x80] sm:$0xff] (!%p613_p2)  ;;  %v2303_v1 = vld [vmem:[%s3892_s4 + $0x88] sm:$0xff] (!%p613_p2)  ;;  %v2304_v2 = vld [vmem:[%s3892_s4 + $0x90] sm:$0xff] (!%p613_p2) }
  0x13   : > { %v2876_v4 = vpack.c.bf16 (!%p613_p2), %v2303_v1, %v2302_v0  ;;  %v2305_v5 = vld [vmem:[%s3892_s4 + $0x98] sm:$0xff] (!%p613_p2)  ;;  %v2306_v8 = vld [vmem:[%s3892_s4 + $0xa0] sm:$0xff] (!%p613_p2)  ;;  %v2307_v9 = vld [vmem:[%s3892_s4 + $0xa8] sm:$0xff] (!%p613_p2) }
  0x14   : > { %v2879_v7 = vpack.c.bf16 %v2305_v5, %v2304_v2  ;;  %v2882_v10 = vpack.c.bf16 %v2307_v9, %v2306_v8  ;;  %v2308_v11 = vld [vmem:[%s3892_s4 + $0xb0] sm:$0xff]  ;;  %v2309_v12 = vld [vmem:[%s3892_s4 + $0xb8] sm:$0xff]  ;;  %v2310_v14 = vld [vmem:[%s3892_s4 + $0xc0] sm:$0xff]  ;;  %s3900_s28 = smov (!%p673_p3, %s2294_s28), 1 }
  0x15   : > { %2877 = vmatpush3.bf16.msra.mxu0 %v2876_v4  ;;  %v2885_v13 = vpack.c.bf16 %v2309_v12, %v2308_v11  ;;  %v2311_v15 = vld [vmem:[%s3892_s4 + $0xc8] sm:$0xff]  ;;  %v2312_v17 = vld [vmem:[%s3892_s4 + $0xd0] sm:$0xff]  ;;  %v2313_v18 = vld [vmem:[%s3892_s4 + $0xd8] sm:$0xff]  ;;  %s2398_s2 = sshll.u32 %s3900_s28, 4  ;;  %s2301_s27 = sshll.u32 %s3900_s28, 3 }
  0x16   : > { %2878 = vmatprep.subr.bf16.mxu0 %v3115_v3  ;;  %v2888_v16 = vpack.c.bf16 %v2311_v15, %v2310_v14  ;;  %v971_v19 = vld [vmem:[%s3893_s0] sm:$0xff]  ;;  %v972_v20 = vld [vmem:[%s3893_s0 + $0x8] sm:$0xff]  ;;  %v973_v21 = vld [vmem:[%s3893_s0 + $0x10] sm:$0xff]  ;;  %v2891_v24 = vpack.c.bf16 %v2313_v18, %v2312_v17  ;;  %s3333_s23 = scalar_lea.vmem %s3894_s30, %s2398_s2  ;;  %s3896_s2 = sld [smem:[#allocation5_spill]] }
  0x17   : > { %v2948_v22 = vpack.c.bf16 %v972_v20, %v971_v19  ;;  %v974_v23 = vld [vmem:[%s3893_s0 + $0x18] sm:$0xff]  ;;  %v2314_v25 = vld [vmem:[%s3892_s4 + $0xe0] sm:$0xff]  ;;  %v2315_v26 = vld [vmem:[%s3892_s4 + $0xe8] sm:$0xff]  ;;  %s681_s1 = scalar_lea.vmem %s3882_s22, %s2301_s27 }
  0x18   : > { %v2951_v27 = vpack.c.bf16 %v974_v23, %v973_v21  ;;  %v975_v28 = vld [vmem:[%s3893_s0 + $0x20] sm:$0xff]  ;;  %v976_v29 = vld [vmem:[%s3893_s0 + $0x28] sm:$0xff]  ;;  %v2894_v30 = vpack.c.bf16 %v2315_v26, %v2314_v25  ;;  %v2316_v31 = vld [vmem:[%s3892_s4 + $0xf0] sm:$0xff] }
  0x19   : > { %2880 = vmatpush3.bf16.msra.mxu0 %v2879_v7  ;;  %2949 = vmatpush3.bf16.msra.mxu1 %v2948_v22  ;;  %v2317_v32 = vld [vmem:[%s3892_s4 + $0xf8] sm:$0xff]  ;;  %v2954_v33 = vpack.c.bf16 %v976_v29, %v975_v28  ;;  %v689_v35 = vld [vmem:[%s3892_s4] sm:$0xff]  ;;  %v690_v36 = vld [vmem:[%s3892_s4 + $0x8] sm:$0xff] }
  0x1a   : > { %2881 = vmatprep.subr.bf16.mxu0 %v3115_v3  ;;  %2950 = vmatprep.subr.bf16.mxu1 %v3115_v3  ;;  %v2897_v34 = vpack.c.bf16 %v2317_v32, %v2316_v31  ;;  %v682_v37 = vld [vmem:[%s3333_s23] sm:$0xff]  ;;  %v2900_v38 = vpack.c.bf16 %v690_v36, %v689_v35  ;;  %v691_v39 = vld [vmem:[%s3892_s4 + $0x10] sm:$0xff]  ;;  %v692_v40 = vld [vmem:[%s3892_s4 + $0x18] sm:$0xff] }
  0x1b   : > { %v2903_v41 = vpack.c.bf16 %v692_v40, %v691_v39  ;;  %v693_v42 = vld [vmem:[%s3892_s4 + $0x20] sm:$0xff]  ;;  %v694_v43 = vld [vmem:[%s3892_s4 + $0x28] sm:$0xff]  ;;  %v695_v45 = vld [vmem:[%s3892_s4 + $0x30] sm:$0xff] }
  0x1c   : > { %v2906_v44 = vpack.c.bf16 %v694_v43, %v693_v42  ;;  %v696_v46 = vld [vmem:[%s3892_s4 + $0x38] sm:$0xff]  ;;  %v697_v48 = vld [vmem:[%s3892_s4 + $0x40] sm:$0xff]  ;;  %v698_v49 = vld [vmem:[%s3892_s4 + $0x48] sm:$0xff] }
  0x1d   : > { %2883 = vmatpush3.bf16.msra.mxu0 %v2882_v10  ;;  %2952 = vmatpush3.bf16.msra.mxu1 %v2951_v27  ;;  %v2909_v47 = vpack.c.bf16 %v696_v46, %v695_v45  ;;  %v2912_v50 = vpack.c.bf16 %v698_v49, %v697_v48  ;;  %v699_v51 = vld [vmem:[%s3892_s4 + $0x50] sm:$0xff]  ;;  %v700_v52 = vld [vmem:[%s3892_s4 + $0x58] sm:$0xff]  ;;  %v701_v54 = vld [vmem:[%s3892_s4 + $0x60] sm:$0xff] }
  0x1e   : > { %2884 = vmatprep.subr.bf16.mxu0 %v3115_v3  ;;  %2953 = vmatprep.subr.bf16.mxu1 %v3115_v3  ;;  %v2915_v53 = vpack.c.bf16 %v700_v52, %v699_v51  ;;  %v702_v55 = vld [vmem:[%s3892_s4 + $0x68] sm:$0xff]  ;;  %v703_v58 = vld [vmem:[%s3892_s4 + $0x70] sm:$0xff]  ;;  %v704_v59 = vld [vmem:[%s3892_s4 + $0x78] sm:$0xff] }
  0x1f   : > { %v2918_v57 = vpack.c.bf16 %v702_v55, %v701_v54  ;;  %v683_v61 = vld [vmem:[%s3333_s23 + $0x8] sm:$0xff]  ;;  %v2921_v62 = vpack.c.bf16 %v704_v59, %v703_v58  ;;  %v2320_v63 = vld [vmem:[%s3892_s4 + $0x100] sm:$0xff]  ;;  %v2322_v4 = vld [vmem:[%s3892_s4 + $0x110] sm:$0xff]  ;;  %s3898_s23 = sld [smem:[#allocation8_spill]] }
  0x20   : > { %v2321_v0 = vld [vmem:[%s3892_s4 + $0x108] sm:$0xff]  ;;  %v687_v1 = vrot.slane %v683_v61, 7  ;;  %v2323_v5 = vld [vmem:[%s3892_s4 + $0x118] sm:$0xff]  ;;  %v2324_v8 = vld [vmem:[%s3892_s4 + $0x120] sm:$0xff] }
  0x21   : > { %2886 = vmatpush3.bf16.msra.mxu0 %v2885_v13  ;;  %2955 = vmatpush3.bf16.msra.mxu1 %v2954_v33  ;;  %v2924_v2 = vpack.c.bf16 %v2321_v0, %v2320_v63  ;;  %v2927_v7 = vpack.c.bf16 %v2323_v5, %v2322_v4  ;;  %v2325_v9 = vld [vmem:[%s3892_s4 + $0x128] sm:$0xff]  ;;  %v2326_v11 = vld [vmem:[%s3892_s4 + $0x130] sm:$0xff]  ;;  %v2327_v12 = vld [vmem:[%s3892_s4 + $0x138] sm:$0xff] }
  0x22   : > { %2887 = vmatprep.subr.bf16.mxu0 %v3115_v3  ;;  %2956 = vmatprep.subr.bf16.mxu1 %v3115_v3  ;;  %v2930_v10 = vpack.c.bf16 %v2325_v9, %v2324_v8  ;;  %v2933_v13 = vpack.c.bf16 %v2327_v12, %v2326_v11  ;;  %v2328_v14 = vld [vmem:[%s3892_s4 + $0x140] sm:$0xff]  ;;  %v2329_v15 = vld [vmem:[%s3892_s4 + $0x148] sm:$0xff]  ;;  %v2330_v17 = vld [vmem:[%s3892_s4 + $0x150] sm:$0xff] }
  0x23   : > { %v2331_v18 = vld [vmem:[%s3892_s4 + $0x158] sm:$0xff]  ;;  %v2332_v20 = vld [vmem:[%s3892_s4 + $0x160] sm:$0xff]  ;;  %v2333_v21 = vld [vmem:[%s3892_s4 + $0x168] sm:$0xff] }
  0x24   : > { %v2939_v19 = vpack.c.bf16 %v2331_v18, %v2330_v17  ;;  %v2942_v22 = vpack.c.bf16 %v2333_v21, %v2332_v20  ;;  %v2334_v23 = vld [vmem:[%s3892_s4 + $0x170] sm:$0xff]  ;;  %v978_v27 = vld [vmem:[%s3893_s0 + $0x38] sm:$0xff]  ;;  %v979_v29 = vld [vmem:[%s3893_s0 + $0x40] sm:$0xff] }
  0x25   : > { %2889 = vmatpush3.bf16.msra.mxu0 %v2888_v16  ;;  %v2936_v16 = vpack.c.bf16 %v2329_v15, %v2328_v14  ;;  %v977_v26 = vld [vmem:[%s3893_s0 + $0x30] sm:$0xff]  ;;  %v982_v33 = vld [vmem:[%s3893_s0 + $0x58] sm:$0xff]  ;;  %v2336_v35 = vld [vmem:[%s3895_s25] ss:$0 sm:$0xff] }
  0x26   : > { %2890 = vmatprep.subr.bf16.mxu0 %v3115_v3  ;;  %v2957_v28 = vpack.c.bf16 %v978_v27, %v977_v26  ;;  %v981_v32 = vld [vmem:[%s3893_s0 + $0x50] sm:$0xff]  ;;  %v1079_v45 = vld [vmem:[%s3867_s7 + $0x8] sm:$0xff]  ;;  %v1082_v52 = vld [vmem:[%s3867_s7 + $0x20] sm:$0xff] }
  0x27   : > { %v1080_v49 = vld [vmem:[%s3867_s7 + $0x10] sm:$0xff]  ;;  %v1086_v58 = vld [vmem:[%s3867_s7 + $0x40] sm:$0xff]  ;;  %v1087_v59 = vld [vmem:[%s3867_s7 + $0x48] sm:$0xff] }
  0x28   : > { %2958 = vmatpush3.bf16.msra.mxu1 %v2957_v28  ;;  %v1084_v55 = vld [vmem:[%s3867_s7 + $0x30] sm:$0xff]  ;;  %v1089_v63 = vld [vmem:[%s3867_s7 + $0x58] sm:$0xff]  ;;  %v1736_v9 = vld [vmem:[%s3873_s13 + $0x20] sm:$0xff] }
  0x29   : > { %2892 = vmatpush3.bf16.msra.mxu0 %v2891_v24  ;;  %v2335_v24 = vld [vmem:[%s3892_s4 + $0x178] sm:$0xff]  ;;  %2959 = vmatprep.subr.bf16.mxu1 %v3115_v3  ;;  %v1734_v5 = vld [vmem:[%s3873_s13 + $0x10] sm:$0xff]  ;;  %v2346_v15 = vld [vmem:[%s3870_s10 + $0x40] sm:$0xff] }
  0x2a   : > { %2893 = vmatprep.subr.bf16.mxu0 %v3115_v3  ;;  %v2945_v25 = vpack.c.bf16 %v2335_v24, %v2334_v23  ;;  %v2344_v12 = vld [vmem:[%s3870_s10 + $0x30] sm:$0xff]  ;;  %v2339_v21 = vld [vmem:[%s3897_s6] ss:$0 sm:$0xff] }
  0x2b   : > { %v2348_v18 = vld [vmem:[%s3870_s10 + $0x50] sm:$0xff]  ;;  %v2340_v23 = vld [vmem:[%s3898_s23] ss:$0 sm:$0xff] }
  0x2d   : > { %2895 = vmatpush3.bf16.msra.mxu0 %v2894_v30  ;;  %v980_v30 = vld [vmem:[%s3893_s0 + $0x48] sm:$0xff] }
  0x2e   : > { %2896 = vmatprep.subr.bf16.mxu0 %v3115_v3  ;;  %v2960_v31 = vpack.c.bf16 %v980_v30, %v979_v29 }
  0x30   : > { %2961 = vmatpush3.bf16.msra.mxu1 %v2960_v31 }
  0x31   : > { %2898 = vmatpush3.bf16.msra.mxu0 %v2897_v34  ;;  %2962 = vmatprep.subr.bf16.mxu1 %v3115_v3  ;;  %v2963_v34 = vpack.c.bf16 %v982_v33, %v981_v32 }
  0x32   : > { %2899 = vmatprep.subr.bf16.mxu0 %v3115_v3 }
  0x34   : > { %2585 = vmatmul.mubr.f32.vlgmr.msra.gmra.mrb[0].mxu0 %v682_v37  ;;  %2964 = vmatpush3.bf16.msra.mxu1 %v2963_v34  ;;  %v2337_v37 = vld [vmem:[%s3896_s2] ss:$0 sm:$0xff] }
  0x35   : > { %2901 = vmatpush3.bf16.msra.mxu0 %v2900_v38  ;;  %2619 = vmatprep.mubr.msk.f32.mxu0 %vm3116_vm0, %v3117_v6 }
  0x36   : > { %2902 = vmatprep.subr.bf16.mxu0 %v3115_v3  ;;  %2965 = vmatprep.subr.bf16.mxu1 %v3115_v3 }
  0x39   : > { %2904 = vmatpush3.bf16.msra.mxu0 %v2903_v41 }
  0x3a   : > { %2905 = vmatprep.subr.bf16.mxu0 %v3115_v3 }
  0x3d   : > { %2907 = vmatpush3.bf16.msra.mxu0 %v2906_v44  ;;  %v1078_v44 = vld [vmem:[%s3867_s7] sm:$0xff] }
  0x3e   : > { %2908 = vmatprep.subr.bf16.mxu0 %v3115_v3 }
  0x41   : > { %2910 = vmatpush3.bf16.msra.mxu0 %v2909_v47  ;;  %v2966_v47 = vpack.c.bf16 %v1079_v45, %v1078_v44 }
  0x42   : > { %2911 = vmatprep.subr.bf16.mxu0 %v3115_v3 }
  0x45   : > { %2913 = vmatpush3.bf16.msra.mxu0 %v2912_v50  ;;  %v1081_v50 = vld [vmem:[%s3867_s7 + $0x18] sm:$0xff] }
  0x46   : > { %2914 = vmatprep.subr.bf16.mxu0 %v3115_v3  ;;  %v2969_v51 = vpack.c.bf16 %v1081_v50, %v1080_v49  ;;  %v1187_v49 = vld [vmem:[%s3870_s10 + $0x8] sm:$0xff] }
  0x49   : > { %2916 = vmatpush3.bf16.msra.mxu0 %v2915_v53  ;;  %v1083_v53 = vld [vmem:[%s3867_s7 + $0x28] sm:$0xff] }
  0x4a   : > { %2917 = vmatprep.subr.bf16.mxu0 %v3115_v3  ;;  %v2972_v54 = vpack.c.bf16 %v1083_v53, %v1082_v52  ;;  %v1188_v53 = vld [vmem:[%s3870_s10 + $0x10] sm:$0xff] }
  0x4d   : > { %2919 = vmatpush3.bf16.msra.mxu0 %v2918_v57  ;;  %v2975_v57 = vpack.c.bf16 %v1085_v56, %v1084_v55  ;;  %v1190_v56 = vld [vmem:[%s3870_s10 + $0x20] sm:$0xff] }
  0x4e   : > { %2920 = vmatprep.subr.bf16.mxu0 %v3115_v3 }
  0x51   : > { %2922 = vmatpush3.bf16.msra.mxu0 %v2921_v62  ;;  %v1088_v62 = vld [vmem:[%s3867_s7 + $0x50] sm:$0xff] }
  0x52   : > { %2923 = vmatprep.subr.bf16.mxu0 %v3115_v3  ;;  %v2981_v0 = vpack.c.bf16 %v1089_v63, %v1088_v62 }
  0x54   : > { %2620 = vmatmul.mubr.msk.f32.vlgmr.msra.gmra.mrb[0].mxu0 %vm2318_vm2, %v687_v1  ;;  %v1732_v1 = vld [vmem:[%s3873_s13] sm:$0xff] }
  0x55   : > { %2925 = vmatpush3.bf16.msra.mxu0 %v2924_v2  ;;  %2654 = vmatprep.mubr.msk.f32.mxu0 %vm3116_vm0, %v3117_v6  ;;  %v1733_v2 = vld [vmem:[%s3873_s13 + $0x8] sm:$0xff] }
  0x56   : > { %2926 = vmatprep.subr.bf16.mxu0 %v3115_v3  ;;  %v3047_v4 = vpack.c.bf16 %v1733_v2, %v1732_v1  ;;  %v2355_v1 = vld [vmem:[%s3870_s10 + $0x78] sm:$0xff] }
  0x59   : > { %2928 = vmatpush3.bf16.msra.mxu0 %v2927_v7  ;;  %v1735_v7 = vld [vmem:[%s3873_s13 + $0x18] sm:$0xff] }
  0x5a   : > { %2929 = vmatprep.subr.bf16.mxu0 %v3115_v3  ;;  %v3050_v8 = vpack.c.bf16 %v1735_v7, %v1734_v5  ;;  %v2356_v5 = vld [vmem:[%s3870_s10 + $0x80] sm:$0xff]  ;;  %v2357_v7 = vld [vmem:[%s3870_s10 + $0x88] sm:$0xff] }
  0x5d   : > { %2931 = vmatpush3.bf16.msra.mxu0 %v2930_v10  ;;  %v1737_v10 = vld [vmem:[%s3873_s13 + $0x28] sm:$0xff] }
  0x5e   : > { %2932 = vmatprep.subr.bf16.mxu0 %v3115_v3  ;;  %v3053_v11 = vpack.c.bf16 %v1737_v10, %v1736_v9 }
  0x61   : > { %2934 = vmatpush3.bf16.msra.mxu0 %v2933_v13  ;;  %v2345_v13 = vld [vmem:[%s3870_s10 + $0x38] sm:$0xff] }
  0x62   : > { %2935 = vmatprep.subr.bf16.mxu0 %v3115_v3  ;;  %v2984_v14 = vpack.c.bf16 %v2345_v13, %v2344_v12  ;;  %v2368_v12 = vld [vmem:[%s3870_s10 + $0xc8] sm:$0xff] }
  0x65   : > { %2937 = vmatpush3.bf16.msra.mxu0 %v2936_v16  ;;  %v2347_v16 = vld [vmem:[%s3870_s10 + $0x48] sm:$0xff] }
  0x66   : > { %2938 = vmatprep.subr.bf16.mxu0 %v3115_v3  ;;  %v2987_v17 = vpack.c.bf16 %v2347_v16, %v2346_v15  ;;  %v2370_v15 = vld [vmem:[%s3870_s10 + $0xd8] sm:$0xff] }
  0x69   : > { %2940 = vmatpush3.bf16.msra.mxu0 %v2939_v19  ;;  %v2349_v19 = vld [vmem:[%s3870_s10 + $0x58] sm:$0xff] }
  0x6a   : > { %2941 = vmatprep.subr.bf16.mxu0 %v3115_v3  ;;  %v2990_v20 = vpack.c.bf16 %v2349_v19, %v2348_v18  ;;  %v2372_v18 = vld [vmem:[%s3870_s10 + $0xe8] sm:$0xff] }
  0x6d   : > { %2943 = vmatpush3.bf16.msra.mxu0 %v2942_v22 }
  0x6e   : > { %2944 = vmatprep.subr.bf16.mxu0 %v3115_v3 }
  0x71   : > { %2946 = vmatpush3.bf16.msra.mxu0 %v2945_v25 }
  0x72   : > { %3046 = vmatprep.subr.bf16.mxu0 %v3115_v3 }
  0x74   : > { %2655 = vmatmul.mubr.f32.vlgmr.msra.gmra.mrb[0].mxu0 %v683_v61  ;;  %v2978_v61 = vpack.c.bf16 %v1087_v59, %v1086_v58  ;;  %v2352_v59 = vld [vmem:[%s3870_s10 + $0x60] sm:$0xff] }
  0x75   : > { %2828 = vmatprep.mubr.msk.f32.mxu0 %vm3116_vm0, %v3117_v6  ;;  %3048 = vmatpush3.bf16.msra.mxu0 %v3047_v4 }
  0x76   : > { %3049 = vmatprep.subr.bf16.mxu0 %v3115_v3 }
  0x79   : > { %3051 = vmatpush3.bf16.msra.mxu0 %v3050_v8  ;;  %v3008_v8 = vpack.c.bf16 %v2357_v7, %v2356_v5  ;;  %v2385_v7 = vld [vmem:[%s3872_s12 + $0x1] ss:$0 sm:$0xff] }
  0x7a   : > { %3052 = vmatprep.subr.bf16.mxu0 %v3115_v3 }
  0x7d   : > { %3054 = vmatpush3.bf16.msra.mxu0 %v3053_v11  ;;  %v2367_v11 = vld [vmem:[%s3870_s10 + $0xc0] sm:$0xff] }
  0x7e   : > { %3055 = vmatprep.subr.bf16.mxu0 %v3115_v3  ;;  %v3011_v13 = vpack.c.bf16 %v2368_v12, %v2367_v11 }
 0x147   : > { %v945_v36 = vpop.f32.mrb[0].mxu0 }
 0x148   : > { %v957_v38 = vmul.f32 %v2336_v35, %v945_v36  ;;  %v2656_v39 = vpop.f32.mrb[1].mxu0 }
 0x14a   : > { %v965_v40 = vadd.f32 %v2337_v37, %v957_v38  ;;  %v2342_v37 = vld [vmem:[%s3868_s8] ss:$0 sm:$0xff] }
 0x14c   : > { %v966_v41 = vadd.f32 3.0, %v965_v40 }
 0x14e   : > { %v967_v42 = vmax.f32 %v966_v41, 0.0 }
 0x150   : > { %v968_v43 = vmin.f32 %v967_v42, 6.0 }
 0x152   : > { %v969_v46 = vmul.f32 %v968_v43, %v965_v40  ;;  %v2343_v40 = vld [vmem:[%s3869_s9] ss:$0 sm:$0xff] }
 0x154   : > { %v970_v48 = vmul.f32 0.16666667, %v969_v46 }
 0x156   : > { %2682 = vmatmul.mubr.msk.f32.vlgmr.msra.gmra.mrb[0].mxu1 %vm983_vm3, %v970_v48 }
 0x157   : > { %2967 = vmatpush3.bf16.msra.mxu1 %v2966_v47  ;;  %2708 = vmatprep.mubr.msk.f32.mxu1 %vm3116_vm0, %v3117_v6 }
 0x158   : > { %2968 = vmatprep.subr.bf16.mxu1 %v3115_v3 }
 0x15b   : > { %2970 = vmatpush3.bf16.msra.mxu1 %v2969_v51 }
 0x15c   : > { %2971 = vmatprep.subr.bf16.mxu1 %v3115_v3 }
 0x15f   : > { %2973 = vmatpush3.bf16.msra.mxu1 %v2972_v54  ;;  %v1189_v54 = vld [vmem:[%s3870_s10 + $0x18] sm:$0xff] }
 0x160   : > { %2974 = vmatprep.subr.bf16.mxu1 %v3115_v3  ;;  %v2996_v55 = vpack.c.bf16 %v1189_v54, %v1188_v53  ;;  %v2380_v53 = vld [vmem:[%s3870_s10 + $0x118] sm:$0xff] }
 0x163   : > { %2976 = vmatpush3.bf16.msra.mxu1 %v2975_v57  ;;  %v1191_v57 = vld [vmem:[%s3870_s10 + $0x28] sm:$0xff] }
 0x164   : > { %2977 = vmatprep.subr.bf16.mxu1 %v3115_v3  ;;  %v2999_v58 = vpack.c.bf16 %v1191_v57, %v1190_v56  ;;  %v1738_v57 = vld [vmem:[%s3874_s14] sm:$0xff] }
 0x167   : > { %2979 = vmatpush3.bf16.msra.mxu1 %v2978_v61  ;;  %v2353_v61 = vld [vmem:[%s3870_s10 + $0x68] sm:$0xff] }
 0x168   : > { %2980 = vmatprep.subr.bf16.mxu1 %v3115_v3  ;;  %v3002_v63 = vpack.c.bf16 %v2353_v61, %v2352_v59  ;;  %v1740_v61 = vld [vmem:[%s3874_s14 + $0x10] sm:$0xff] }
 0x16b   : > { %2982 = vmatpush3.bf16.msra.mxu1 %v2981_v0  ;;  %v2354_v0 = vld [vmem:[%s3870_s10 + $0x70] sm:$0xff] }
 0x16c   : > { %2983 = vmatprep.subr.bf16.mxu1 %v3115_v3  ;;  %v3005_v4 = vpack.c.bf16 %v2355_v1, %v2354_v0  ;;  %v1742_v0 = vld [vmem:[%s3874_s14 + $0x20] sm:$0xff]  ;;  %v1743_v1 = vld [vmem:[%s3874_s14 + $0x28] sm:$0xff] }
 0x16e   : > { %2709 = vmatmul.mubr.msk.f32.vlgmr.msra.gmra.mrb[2].mxu1 %vm983_vm3, %v970_v48  ;;  %v1186_v48 = vld [vmem:[%s3870_s10] sm:$0xff] }
 0x16f   : > { %2723 = vmatprep.mubr.msk.f32.mxu1 %vm3116_vm0, %v3117_v6  ;;  %2985 = vmatpush3.bf16.msra.mxu1 %v2984_v14  ;;  %v2993_v51 = vpack.c.bf16 %v1187_v49, %v1186_v48  ;;  %v2369_v14 = vld [vmem:[%s3870_s10 + $0xd0] sm:$0xff]  ;;  %v2377_v48 = vld [vmem:[%s3870_s10 + $0x100] sm:$0xff]  ;;  %v2378_v49 = vld [vmem:[%s3870_s10 + $0x108] sm:$0xff] }
 0x170   : > { %2986 = vmatprep.subr.bf16.mxu1 %v3115_v3  ;;  %v3014_v16 = vpack.c.bf16 %v2370_v15, %v2369_v14 }
 0x173   : > { %2988 = vmatpush3.bf16.msra.mxu1 %v2987_v17  ;;  %v2371_v17 = vld [vmem:[%s3870_s10 + $0xe0] sm:$0xff] }
 0x174   : > { %2989 = vmatprep.subr.bf16.mxu1 %v3115_v3  ;;  %v3017_v19 = vpack.c.bf16 %v2372_v18, %v2371_v17 }
 0x177   : > { %2991 = vmatpush3.bf16.msra.mxu1 %v2990_v20 }
 0x178   : > { %2992 = vmatprep.subr.bf16.mxu1 %v3115_v3 }
 0x229   : > { %v1053_v22 = vpop.f32.mrb[0].mxu1 }
 0x22a   : > { %v1064_v24 = vmul.f32 %v2339_v21, %v1053_v22  ;;  %v2683_v25 = vpop.f32.mrb[1].mxu1  ;;  %v2359_v22 = vld [vmem:[%s3871_s11] ss:$0 sm:$0xff] }
 0x22c   : > { %v1072_v26 = vadd.f32 %v2340_v23, %v1064_v24  ;;  %v2360_v24 = vld [vmem:[%s3872_s12] ss:$0 sm:$0xff] }
 0x22e   : > { %v1073_v27 = vadd.f32 3.0, %v1072_v26 }
 0x230   : > { %v1074_v28 = vmax.f32 %v1073_v27, 0.0 }
 0x232   : > { %v1075_v29 = vmin.f32 %v1074_v28, 6.0 }
 0x234   : > { %v1076_v30 = vmul.f32 %v1075_v29, %v1072_v26 }
 0x236   : > { %v3585_v31 = vmul.f32 0.16666667, %v1076_v30 }
 0x238   : > { %v1718_v32 = vsel %vm1199_vm4, %v3585_v31, 0.0 }
 0x239   : > { %v1719_v33 = vrot.slane %v1718_v32, 4 }
 0x23b   : > { %v1720_v34 = vadd.f32 %v1719_v33, %v1718_v32  ;;  %v2361_v33 = vld [vmem:[%s3870_s10 + $0x90] sm:$0xff] }
 0x23d   : > { %v1721_v35 = vrot.slane %v1720_v34, 2 }
 0x23f   : > { %v1722_v36 = vadd.f32 %v1721_v35, %v1720_v34  ;;  %v2362_v34 = vld [vmem:[%s3870_s10 + $0x98] sm:$0xff] }
 0x241   : > { %v1723_v38 = vrot.slane %v1722_v36, 1  ;;  %v1156_v39 = vpop.f32.mrb[2].mxu1 }
 0x242   : > { %v1167_v41 = vmul.f32 %v2342_v37, %v1156_v39  ;;  %v2710_v42 = vpop.f32.mrb[3].mxu1  ;;  %v2364_v39 = vld [vmem:[%s3870_s10 + $0xa8] sm:$0xff] }
 0x243   : > { %v1724_v43 = vadd.f32 %v1723_v38, %v1722_v36  ;;  %v3020_v36 = vpack.c.bf16 %v2362_v34, %v2361_v33  ;;  %v2363_v38 = vld [vmem:[%s3870_s10 + $0xa0] sm:$0xff]  ;;  %v2366_v42 = vld [vmem:[%s3870_s10 + $0xb8] sm:$0xff] }
 0x244   : > { %v1175_v44 = vadd.f32 %v2343_v40, %v1167_v41  ;;  %v3023_v40 = vpack.c.bf16 %v2364_v39, %v2363_v38  ;;  %v2365_v41 = vld [vmem:[%s3870_s10 + $0xb0] sm:$0xff]  ;;  %v1890_v33 = vld [vmem:[%s3875_s15] sm:$0x1] }
 0x245   : > { %2829 = vmatmul.mubr.msk.f32.vlgmr.msra.gmra.mrb[2].mxu0 %vm1199_vm4, %v1724_v43  ;;  %v3026_v43 = vpack.c.bf16 %v2366_v42, %v2365_v41  ;;  %v2067_v39 = vld [vmem:[%s3879_s19] sm:$0xff] }
 0x246   : > { %v1176_v45 = vadd.f32 3.0, %v1175_v44  ;;  %2835 = vmatprep.mubr.msk.f32.mxu0 %vm3116_vm0, %v3117_v6 }
 0x248   : > { %v1177_v46 = vmax.f32 %v1176_v45, 0.0  ;;  %v2376_v45 = vld [vmem:[%s3870_s10 + $0xf8] sm:$0xff] }
 0x24a   : > { %v1178_v47 = vmin.f32 %v1177_v46, 6.0 }
 0x24c   : > { %v1179_v50 = vmul.f32 %v1178_v47, %v1175_v44  ;;  %v2375_v44 = vld [vmem:[%s3870_s10 + $0xf0] sm:$0xff] }
 0x24d   : > { %v3029_v47 = vpack.c.bf16 %v2376_v45, %v2375_v44  ;;  %v2070_v44 = vld [vmem:[%s3879_s19 + $0x18] sm:$0xff] }
 0x24e   : > { %v3604_v52 = vmul.f32 0.16666667, %v1179_v50 }
 0x250   : > { %2724 = vmatmul.mubr.msk.f32.vlgmr.msra.gmra.mrb[4].mxu1 %vm1199_vm4, %v3604_v52  ;;  %v1181_v62 = vrot.slane %v3604_v52, 7  ;;  %v1184_v9 = vrot.slane %v3604_v52, 1 }
 0x251   : > { %2994 = vmatpush3.bf16.msra.mxu1 %v2993_v51  ;;  %2738 = vmatprep.mubr.msk.f32.mxu1 %vm3116_vm0, %v3117_v6  ;;  %v3032_v51 = vpack.c.bf16 %v2378_v49, %v2377_v48  ;;  %v1978_v49 = vsub.s32 0, %v3394_v60  ;;  %v2064_v60 = vld [vmem:[%s3878_s18 + $0x18] sm:$0xff] }
 0x252   : > { %2995 = vmatprep.subr.bf16.mxu1 %v3115_v3  ;;  %v1182_v2 = vsel %vm686_vm1, 0.0, %v1181_v62  ;;  %v1185_v10 = vsel %vm1183_vm5, 0.0, %v1184_v9  ;;  %v1741_v62 = vld [vmem:[%s3874_s14 + $0x18] sm:$0xff] }
 0x255   : > { %2997 = vmatpush3.bf16.msra.mxu1 %v2996_v55 }
 0x256   : > { %2998 = vmatprep.subr.bf16.mxu1 %v3115_v3 }
 0x259   : > { %3000 = vmatpush3.bf16.msra.mxu1 %v2999_v58  ;;  %v1739_v58 = vld [vmem:[%s3874_s14 + $0x8] sm:$0xff] }
 0x25a   : > { %3001 = vmatprep.subr.bf16.mxu1 %v3115_v3  ;;  %v3038_v59 = vpack.c.bf16 %v1739_v58, %v1738_v57 }
 0x25c   : > { %2739 = vmatmul.mubr.msk.f32.vlgmr.msra.gmra.mrb[4].mxu1 %vm1199_vm4, %v1182_v2  ;;  %v3044_v2 = vpack.c.bf16 %v1743_v1, %v1742_v0 }
 0x25d   : > { %3003 = vmatpush3.bf16.msra.mxu1 %v3002_v63  ;;  %2753 = vmatprep.mubr.msk.f32.mxu1 %vm3116_vm0, %v3117_v6  ;;  %v3041_v63 = vpack.c.bf16 %v1741_v62, %v1740_v61  ;;  %v2065_v62 = vld [vmem:[%s3878_s18 + $0x20] sm:$0xff] }
 0x25e   : > { %3004 = vmatprep.subr.bf16.mxu1 %v3115_v3 }
 0x261   : > { %3006 = vmatpush3.bf16.msra.mxu1 %v3005_v4  ;;  %v2383_v4 = vld [vmem:[%s3871_s11 + $0x1] ss:$0 sm:$0xff] }
 0x262   : > { %3007 = vmatprep.subr.bf16.mxu1 %v3115_v3 }
 0x265   : > { %3009 = vmatpush3.bf16.msra.mxu1 %v3008_v8 }
 0x266   : > { %3010 = vmatprep.subr.bf16.mxu1 %v3115_v3 }
 0x268   : > { %2754 = vmatmul.mubr.msk.f32.vlgmr.msra.gmra.mrb[4].mxu1 %vm1199_vm4, %v1185_v10 }
 0x269   : > { %2768 = vmatprep.mubr.msk.f32.mxu1 %vm3116_vm0, %v3117_v6  ;;  %3012 = vmatpush3.bf16.msra.mxu1 %v3011_v13 }
 0x26a   : > { %3013 = vmatprep.subr.bf16.mxu1 %v3115_v3 }
 0x26d   : > { %3015 = vmatpush3.bf16.msra.mxu1 %v3014_v16 }
 0x26e   : > { %3016 = vmatprep.subr.bf16.mxu1 %v3115_v3 }
 0x271   : > { %3018 = vmatpush3.bf16.msra.mxu1 %v3017_v19 }
 0x272   : > { %3019 = vmatprep.subr.bf16.mxu1 %v3115_v3 }
 0x318   : > { %v3680_v20 = vpop.f32.mrb[2].mxu0 }
 0x319   : > { %v2830_v21 = vpop.f32.mrb[3].mxu0 }
 0x33b   : > { %v1422_v23 = vpop.f32.mrb[4].mxu1 }
 0x33c   : > { %v1434_v25 = vmul.f32 %v2359_v22, %v1422_v23  ;;  %v2755_v26 = vpop.f32.mrb[5].mxu1 }
 0x33d   : > { %v1982_v26 = vld [vmem:[%s3877_s17 + $0x8] sm:$0xf] }
 0x33e   : > { %v1442_v27 = vadd.f32 %v2360_v24, %v1434_v25  ;;  %v1981_v25 = vld [vmem:[%s3877_s17] sm:$0xff] }
 0x340   : > { %v1443_v28 = vadd.f32 3.0, %v1442_v27 }
 0x342   : > { %v1444_v29 = vmax.f32 %v1443_v28, 0.0  ;;  %v3060_v28 = vpack.c.bf16 %v1982_v26, %v1981_v25 }
 0x344   : > { %v1445_v30 = vmin.f32 %v1444_v29, 6.0  ;;  %v1897_v29 = vld [vmem:[%s3876_s16 + $0x8] sm:$0xf] }
 0x346   : > { %v1446_v32 = vmul.f32 %v1445_v30, %v1442_v27  ;;  %v1896_v27 = vld [vmem:[%s3876_s16] sm:$0xff] }
 0x347   : > { %v3056_v30 = vpack.c.bf16 %v1897_v29, %v1896_v27 }
 0x348   : > { %v1447_v35 = vmul.f32 0.16666667, %v1446_v32 }
 0x349   : > { %3058 = vmatpush3.bf16.msk.msra.mxu0 %vm3057_vm8, %v3056_v30 }
 0x34a   : > { %v3695_v37 = vadd.f32 %v1447_v35, %v3604_v52  ;;  %v2379_v52 = vld [vmem:[%s3870_s10 + $0x110] sm:$0xff]  ;;  %3063 = vmatprep.subr.bf16.mxu0 %v3115_v3 }
 0x34b   : > { %v3035_v54 = vpack.c.bf16 %v2380_v53, %v2379_v52 }
 0x34c   : > { %2769 = vmatmul.mubr.msk.f32.vlgmr.msra.gmra.mrb[6].mxu1 %vm1199_vm4, %v3695_v37  ;;  %v1449_v46 = vrot.slane %v3695_v37, 7  ;;  %v1451_v55 = vrot.slane %v3695_v37, 1 }
 0x34d   : > { %3021 = vmatpush3.bf16.msra.mxu1 %v3020_v36  ;;  %2783 = vmatprep.mubr.msk.f32.mxu1 %vm3116_vm0, %v3117_v6 }
 0x34e   : > { %3022 = vmatprep.subr.bf16.mxu1 %v3115_v3  ;;  %v1450_v50 = vsel %vm686_vm1, 0.0, %v1449_v46  ;;  %v1452_v56 = vsel %vm1183_vm5, 0.0, %v1451_v55  ;;  %v2071_v46 = vld [vmem:[%s3879_s19 + $0x20] sm:$0xff] }
 0x351   : > { %3024 = vmatpush3.bf16.msra.mxu1 %v3023_v40  ;;  %v2068_v40 = vld [vmem:[%s3879_s19 + $0x8] sm:$0xff] }
 0x352   : > { %3025 = vmatprep.subr.bf16.mxu1 %v3115_v3  ;;  %v3064_v42 = vpack.c.bf16 %v2068_v40, %v2067_v39 }
 0x355   : > { %3027 = vmatpush3.bf16.msra.mxu1 %v3026_v43 }
 0x356   : > { %3028 = vmatprep.subr.bf16.mxu1 %v3115_v3 }
 0x358   : > { %2784 = vmatmul.mubr.msk.f32.vlgmr.msra.gmra.mrb[6].mxu1 %vm1199_vm4, %v1450_v50  ;;  %v2061_v50 = vld [vmem:[%s3878_s18] sm:$0xff] }
 0x359   : > { %3030 = vmatpush3.bf16.msra.mxu1 %v3029_v47  ;;  %2798 = vmatprep.mubr.msk.f32.mxu1 %vm3116_vm0, %v3117_v6  ;;  %v2072_v47 = vld [vmem:[%s3879_s19 + $0x28] sm:$0xff] }
 0x35a   : > { %3031 = vmatprep.subr.bf16.mxu1 %v3115_v3  ;;  %v3070_v48 = vpack.c.bf16 %v2072_v47, %v2071_v46 }
 0x35d   : > { %3033 = vmatpush3.bf16.msra.mxu1 %v3032_v51  ;;  %v2062_v51 = vld [vmem:[%s3878_s18 + $0x8] sm:$0xff] }
 0x35e   : > { %3034 = vmatprep.subr.bf16.mxu1 %v3115_v3  ;;  %v3073_v57 = vpack.c.bf16 %v2062_v51, %v2061_v50 }
 0x361   : > { %3036 = vmatpush3.bf16.msra.mxu1 %v3035_v54 }
 0x362   : > { %3037 = vmatprep.subr.bf16.mxu1 %v3115_v3 }
 0x364   : > { %2799 = vmatmul.mubr.msk.f32.vlgmr.msra.gmra.mrb[6].mxu1 %vm1199_vm4, %v1452_v56 }
 0x365   : > { %2813 = vmatprep.mubr.msk.f32.mxu1 %vm3116_vm0, %v3117_v6  ;;  %3039 = vmatpush3.bf16.msra.mxu1 %v3038_v59  ;;  %v2063_v59 = vld [vmem:[%s3878_s18 + $0x10] sm:$0xff] }
 0x366   : > { %3040 = vmatprep.subr.bf16.mxu1 %v3115_v3  ;;  %v3076_v61 = vpack.c.bf16 %v2064_v60, %v2063_v59 }
 0x369   : > { %3042 = vmatpush3.bf16.msra.mxu1 %v3041_v63  ;;  %v2066_v63 = vld [vmem:[%s3878_s18 + $0x28] sm:$0xff] }
 0x36a   : > { %3043 = vmatprep.subr.bf16.mxu1 %v3115_v3  ;;  %v3079_v0 = vpack.c.bf16 %v2066_v63, %v2065_v62 }
 0x36d   : > { %3045 = vmatpush3.bf16.msra.mxu1 %v3044_v2 }
 0x36e   : > { %3059 = vmatprep.subr.bf16.mxu1 %v3115_v3 }
 0x437   : > { %v1689_v5 = vpop.f32.mrb[6].mxu1 }
 0x438   : > { %v1702_v8 = vmul.f32 %v2383_v4, %v1689_v5  ;;  %v2800_v9 = vpop.f32.mrb[7].mxu1  ;;  %v2395_v5 = vld [vmem:[%s3881_s21] ss:$0 sm:$0xff] }
 0x43a   : > { %v1711_v10 = vadd.f32 %v2385_v7, %v1702_v8 }
 0x43c   : > { %v1712_v11 = vadd.f32 3.0, %v1711_v10 }
 0x43e   : > { %v1713_v12 = vmax.f32 %v1712_v11, 0.0 }
 0x440   : > { %v1714_v13 = vmin.f32 %v1713_v12, 6.0 }
 0x442   : > { %v1715_v14 = vmul.f32 %v1714_v13, %v1711_v10 }
 0x444   : > { %v1716_v15 = vmul.f32 0.16666667, %v1715_v14 }
 0x446   : > { %v1717_v16 = vadd.f32 %v1716_v15, %v3695_v37 }
 0x448   : > { %v1725_v17 = vsel %vm1199_vm4, %v1717_v16, 0.0 }
 0x449   : > { %v1726_v18 = vrot.slane %v1725_v17, 4 }
 0x44b   : > { %v1727_v19 = vadd.f32 %v1726_v18, %v1725_v17 }
 0x44d   : > { %v1728_v21 = vrot.slane %v1727_v19, 2 }
 0x44f   : > { %v1729_v22 = vadd.f32 %v1728_v21, %v1727_v19 }
 0x451   : > { %v1730_v23 = vrot.slane %v1729_v22, 1 }
 0x453   : > { %v1731_v24 = vadd.f32 %v1730_v23, %v1729_v22 }
 0x455   : > { %2814 = vmatmul.mubr.msk.f32.vlgmr.msra.gmra.mrb[8].mxu1 %vm1199_vm4, %v1731_v24 }
 0x456   : > { %2842 = vmatprep.mubr.msk.f32.mxu1 %vm3116_vm0, %v3117_v6  ;;  %3062 = vmatpush3.bf16.msk.msra.mxu1 %vm3057_vm8, %v3060_v28 }
 0x528   : > { %v1813_v32 = vpop.f32.mrb[8].mxu1 }
 0x529   : > { %v1887_v34 = vadd.f32 %v3680_v20, %v1813_v32  ;;  %v2815_v35 = vpop.f32.mrb[9].mxu1  ;;  %v2069_v20 = vld [vmem:[%s3879_s19 + $0x10] sm:$0xff] }
 0x52a   : > { %v3067_v45 = vpack.c.bf16 %v2070_v44, %v2069_v20 }
 0x52b   : > { %v1891_v36 = vadd.f32 %v1890_v33, %v1887_v34 }
 0x52d   : > { %v1892_v37 = vadd.f32 3.0, %v1891_v36 }
 0x52f   : > { %v1893_v38 = vmax.f32 %v1892_v37, 0.0 }
 0x531   : > { %v1894_v41 = vmin.f32 %v1893_v38, 6.0 }
 0x533   : > { %v1895_v43 = vmul.f32 0.16666667, %v1894_v41 }
 0x535   : > { %2836 = vmatmul.mubr.msk.f32.vlgmr.msra.gmra.mrb[4].mxu0 %vm1898_vm9, %v1895_v43  ;;  %2843 = vmatmul.mubr.msk.f32.vlgmr.msra.gmra.mrb[10].mxu1 %vm1898_vm9, %v1895_v43 }
 0x536   : > { %3065 = vmatpush3.bf16.msra.mxu0 %v3064_v42  ;;  %2857 = vmatprep.mubr.msk.f32.mxu0 %vm3116_vm0, %v3117_v6 }
 0x537   : > { %3066 = vmatprep.subr.bf16.mxu0 %v3115_v3 }
 0x53a   : > { %3068 = vmatpush3.bf16.msra.mxu0 %v3067_v45 }
 0x53b   : > { %3069 = vmatprep.subr.bf16.mxu0 %v3115_v3 }
 0x53e   : > { %3071 = vmatpush3.bf16.msra.mxu0 %v3070_v48 }
 0x53f   : > { %3072 = vmatprep.subr.bf16.mxu0 %v3115_v3 }
 0x608   : > { %v1972_v52 = vpop.f32.mrb[4].mxu0  ;;  %v2052_v53 = vpop.f32.mrb[10].mxu1 }
 0x609   : > { %v2059_v54 = vrot.slane %v2052_v53, %v1978_v49  ;;  %v2837_v55 = vpop.f32.mrb[5].mxu0  ;;  %v2844_v56 = vpop.f32.mrb[11].mxu1  ;;  %v1979_v1 = vrot.slane %v1972_v52, %v1978_v49 }
 0x60b   : > { %v2060_v58 = vmul.f32 %v2059_v54, %v1717_v16  ;;  %v1980_v2 = vmul.f32 %v1979_v1, %v3585_v31 }
 0x60d   : > { %2858 = vmatmul.mubr.msk.f32.vlgmr.msra.gmra.mrb[6].mxu0 %vm1199_vm4, %v2060_v58 }
 0x60e   : > { %3074 = vmatpush3.bf16.msra.mxu0 %v3073_v57  ;;  %2872 = vmatprep.mubr.msk.f32.mxu0 %vm3116_vm0, %v3117_v6  ;;  %v2394_v6 = vld [vmem:[%s3880_s20] ss:$0 sm:$0xff] }
 0x60f   : > { %3075 = vmatprep.subr.bf16.mxu0 %v3115_v3 }
 0x612   : > { %3077 = vmatpush3.bf16.msra.mxu0 %v3076_v61 }
 0x613   : > { %3078 = vmatprep.subr.bf16.mxu0 %v3115_v3 }
 0x616   : > { %3080 = vmatpush3.bf16.msra.mxu0 %v3079_v0 }
 0x619   : > { %2873 = vmatmul.mubr.msk.f32.vlgmr.msra.gmra.mrb[6].mxu0 %vm1199_vm4, %v1980_v2 }
 0x6ec   : > { %v2215_v4 = vpop.f32.mrb[6].mxu0 }
 0x6ed   : > { %v2226_v7 = vmul.f32 %v2394_v6, %v2215_v4  ;;  %v2874_v8 = vpop.f32.mrb[7].mxu0 }
 0x6ef   : > { %v2234_v9 = vadd.f32 %v2395_v5, %v2226_v7 }
 0x6f1   : > { %v2235_v10 = vadd.f32 3.0, %v2234_v9 }
 0x6f3   : > { %v2236_v11 = vmax.f32 %v2235_v10, 0.0 }
 0x6f5   : > { %v2237_v3 = vmin.f32 %v2236_v11, 6.0 }
 0x6f7   : > { %v2238_v12 = vmul.f32 %v2237_v3, %v2234_v9 }
 0x6f9   : > { %v2239_v31 = vmul.f32 0.16666667, %v2238_v12 }
 0x6fb   : > { %2240 = vst [vmem:[%s681_s1] sm:$0xff] %v2239_v31 }
 0x6fc PF: > { %s32_s3 = sadd.s32 1, %s3113_s3  }
 0x6fd   : > { %p29_p4 = scmp.ge.s32.totalorder %s32_s3, 4  }
 0x6ff   :  { %31 = sbr.rel (!%p29_p4) target bundleno = 8 (0x8), region = 147 }

</bundles_post_ra>
